<compile_context>
chip_gen: v5e
topology: v5e:2x2
jax: 0.10.0
libtpu: 0.0.40
codegen_flags: <defaults>
</compile_context>

<pallas_src>
import functools

import jax
import jax.numpy as jnp
from jax.experimental import pallas as pl
from jax.experimental.pallas import tpu as pltpu


# ----------------------------------------------------------------------------
# Fused kernel factory
# ----------------------------------------------------------------------------
def _make_fused_rnn_kernel(num_layers, seq_len, batch_blk, hidden, num_out):
    H = hidden
    G = 4 * H

    def kernel(*refs):
        xg0_ref, whh0_ref = refs[0], refs[1]
        n_rest = 3 * (num_layers - 1)
        rest = refs[2:2 + n_rest]
        h0_ref, c0_ref, dec_w_ref, dec_b_ref = refs[2 + n_rest:6 + n_rest]
        logits_ref, h_n_ref, c_n_ref = refs[6 + n_rest:9 + n_rest]

        # Weights total a few tens of KB at these sizes: hoist once before the
        # recurrence so they stay live in vregs/VMEM.
        # TODO(synk): for much larger H / num_layers, re-read refs inside the
        # loop instead (hoisting pins vregs across the fully unrolled body).
        whh = [whh0_ref[...]] + [rest[3 * i + 1][...] for i in range(num_layers - 1)]
        wih = [rest[3 * i][...] for i in range(num_layers - 1)]          # (H, 4H)
        bs = [rest[3 * i + 2][...] for i in range(num_layers - 1)]       # (1, 4H)
        dec_w = dec_w_ref[...]                                           # (H, out)
        dec_b = dec_b_ref[...]                                           # (1, out)

        # Lane mask hoisted out of the loop (JAX does not CSE broadcasts).
        lane = jax.lax.broadcasted_iota(jnp.int32, (batch_blk, G), 1)
        g_mask = (lane >= 2 * H) & (lane < 3 * H)

        def lstm_cell(gates, c):
            # g-gate pre-activations were pre-scaled by 2 in the wrapper, so
            # tanh(x) = 2*sigmoid(2x) - 1 needs a single EUP (sigmoid) pass over
            # the full 128-lane gates vector; the fixup is cheap VPU filler.
            s = jax.nn.sigmoid(gates)
            act = jnp.where(g_mask, 2.0 * s - 1.0, s)
            i_g = act[:, 0 * H:1 * H]
            f_g = act[:, 1 * H:2 * H]
            g_g = act[:, 2 * H:3 * H]
            o_g = act[:, 3 * H:4 * H]
            c_new = f_g * c + i_g * g_g
            h_new = o_g * jnp.tanh(c_new)
            return h_new, c_new

        h0 = h0_ref[...]                               # (Bb, L, H)
        c0 = c0_ref[...]
        hs = [h0[:, l, :] for l in range(num_layers)]
        cs = [c0[:, l, :] for l in range(num_layers)]

        # Precomputed, non-recurrent layer-0 gates (bias folded in): (Bb, T, 4H).
        xg0 = xg0_ref[...]

        top_hs = []
        # Fully unrolled static time loop (T is small).
        # TODO(synk): for large T, switch to lax.fori_loop with partial unroll
        # plus a VMEM scratch for the top-layer h history to bound vreg usage.
        for t in range(seq_len):
            # Recurrent-h matmuls first: they depend only on step t-1 state, so
            # the scheduler can overlap them with the cross-layer chain below.
            h_gates = [jnp.dot(hs[l], whh[l], preferred_element_type=jnp.float32)
                       for l in range(num_layers)]

            # Layer 0: input contribution + bias precomputed in the wrapper.
            gates = xg0[:, t, :] + h_gates[0]
            hs[0], cs[0] = lstm_cell(gates, cs[0])
            x = hs[0]

            # TODO(synk): nn.LSTM inter-layer dropout is train-only; eval-mode
            # (identity) is assumed here.
            for l in range(1, num_layers):
                gates = (jnp.dot(x, wih[l - 1], preferred_element_type=jnp.float32)
                         + h_gates[l] + bs[l - 1])
                hs[l], cs[l] = lstm_cell(gates, cs[l])
                x = hs[l]

            top_hs.append(x)

        # Deferred decoder: one (Bb*T, H) @ (H, num_out) matmul after the loop,
        # written to the output exactly once.
        h_all = jnp.stack(top_hs, axis=1)                       # (Bb, T, H)
        h_flat = h_all.reshape(batch_blk * seq_len, H)
        logits = (jnp.dot(h_flat, dec_w, preferred_element_type=jnp.float32)
                  + dec_b)
        logits_ref[...] = logits.reshape(batch_blk, seq_len, num_out)

        # Final hidden/cell state, written once.
        h_n_ref[...] = jnp.stack(hs, axis=1)                    # (Bb, L, H)
        c_n_ref[...] = jnp.stack(cs, axis=1)

    return kernel


# ----------------------------------------------------------------------------
# Wrapper: one-time weight layout plumbing + single pallas_call
# ----------------------------------------------------------------------------
def rnn_forward(params, input_seq, hidden_state, num_layers, num_batch_blocks=1):
    T, B = input_seq.shape
    H = params["w_hh_0"].shape[1]           # hidden size
    num_out = params["dec_w"].shape[0]      # decoder output dim
    L = num_layers
    hp = jax.lax.Precision.HIGHEST

    if num_batch_blocks < 1 or B % num_batch_blocks != 0:
        num_batch_blocks = 1
    Bb = B // num_batch_blocks

    # g-gate pre-scale by 2 so the kernel can use tanh(x) = 2*sigmoid(2x) - 1.
    gate_scale = jnp.ones((4 * H,), jnp.float32).at[2 * H:3 * H].set(2.0)

    # Layer 0: embedding folded into w_ih_0, then the full non-recurrent input
    # contribution (all timesteps, bias included) precomputed outside the
    # sequential recurrence. Batch-leading layout for the batch grid.
    tbl0 = jnp.dot(params["embedding"], params["w_ih_0"].T, precision=hp) * gate_scale
    b0 = (params["b_ih_0"] + params["b_hh_0"]) * gate_scale
    x_gates0 = jnp.transpose(tbl0[input_seq] + b0, (1, 0, 2))          # (B, T, 4H)

    whh0 = params["w_hh_0"].T * gate_scale                             # (H, 4H)
    extra = []
    for l in range(1, num_layers):
        extra += [
            params[f"w_ih_{l}"].T * gate_scale,                        # (H, 4H)
            params[f"w_hh_{l}"].T * gate_scale,                        # (H, 4H)
            ((params[f"b_ih_{l}"] + params[f"b_hh_{l}"]) * gate_scale
             ).reshape(1, 4 * H),
        ]
    dec_w = params["dec_w"].T                                          # (H, out)
    dec_b = params["dec_b"].reshape(1, num_out)

    h0, c0 = hidden_state
    h0_b = jnp.transpose(h0, (1, 0, 2))                                # (B, L, H)
    c0_b = jnp.transpose(c0, (1, 0, 2))

    def full(shape):
        return pl.BlockSpec(shape, lambda b, _s=shape: (0,) * len(_s))

    def batched(inner):
        return pl.BlockSpec((Bb,) + inner, lambda b: (b, 0, 0))

    in_specs = [batched((T, 4 * H)), full((H, 4 * H))]
    for _ in range(1, num_layers):
        in_specs += [full((H, 4 * H)), full((H, 4 * H)), full((1, 4 * H))]
    in_specs += [batched((L, H)), batched((L, H)),
                 full((H, num_out)), full((1, num_out))]
    out_specs = (batched((T, num_out)), batched((L, H)), batched((L, H)))

    kernel = _make_fused_rnn_kernel(num_layers, T, Bb, H, num_out)
    logits_b, h_n_b, c_n_b = pl.pallas_call(
        kernel,
        grid=(num_batch_blocks,),
        in_specs=in_specs,
        out_specs=out_specs,
        out_shape=(
            jax.ShapeDtypeStruct((B, T, num_out), jnp.float32),
            jax.ShapeDtypeStruct((B, L, H), jnp.float32),
            jax.ShapeDtypeStruct((B, L, H), jnp.float32),
        ),
        compiler_params=pltpu.CompilerParams(
            dimension_semantics=("parallel",)),
    )(x_gates0, whh0, *extra, h0_b, c0_b, dec_w, dec_b)

    # Back to PyTorch conventions (time-major logits, layer-major states).
    logits = jnp.transpose(logits_b, (1, 0, 2))                        # (T, B, out)
    h_n = jnp.transpose(h_n_b, (1, 0, 2))                              # (L, B, H)
    c_n = jnp.transpose(c_n_b, (1, 0, 2))
    # Mirror PyTorch's .detach() on the returned hidden state.
    return logits, (jax.lax.stop_gradient(h_n), jax.lax.stop_gradient(c_n))


# ----------------------------------------------------------------------------
# Pure-JAX reference (numeric sanity check only)
# ----------------------------------------------------------------------------
def rnn_forward_ref(params, input_seq, hidden_state, num_layers):
    hp = jax.lax.Precision.HIGHEST
    T, B = input_seq.shape
    x = params["embedding"][input_seq]                  # (T, B, V)
    h0, c0 = hidden_state
    h_finals, c_finals = [], []
    for layer in range(num_layers):
        w_ih = params[f"w_ih_{layer}"]
        w_hh = params[f"w_hh_{layer}"]
        b = params[f"b_ih_{layer}"] + params[f"b_hh_{layer}"]
        H = w_hh.shape[1]
        h, c = h0[layer], c0[layer]
        outs = []
        for t in range(T):
            gates = (jnp.dot(x[t], w_ih.T, precision=hp)
                     + jnp.dot(h, w_hh.T, precision=hp) + b)
            i_g = jax.nn.sigmoid(gates[:, 0 * H:1 * H])
            f_g = jax.nn.sigmoid(gates[:, 1 * H:2 * H])
            g_g = jnp.tanh(gates[:, 2 * H:3 * H])
            o_g = jax.nn.sigmoid(gates[:, 3 * H:4 * H])
            c = f_g * c + i_g * g_g
            h = o_g * jnp.tanh(c)
            outs.append(h)
        x = jnp.stack(outs, axis=0)
        h_finals.append(h)
        c_finals.append(c)
    logits = jnp.dot(x, params["dec_w"].T, precision=hp) + params["dec_b"]
    return logits, (jnp.stack(h_finals), jnp.stack(c_finals))


# ----------------------------------------------------------------------------
# Deterministic parameter construction (shapes mirror the PyTorch module)
# ----------------------------------------------------------------------------
def init_params(key, num_chars, hidden_size, num_layers):
    params = {}
    k_emb, k_dec_w, k_dec_b, k_rest = jax.random.split(key, 4)
    params["embedding"] = jax.random.normal(k_emb, (num_chars, num_chars),
                                            jnp.float32)
    scale = 1.0 / jnp.sqrt(hidden_size)
    params["dec_w"] = scale * jax.random.normal(k_dec_w, (num_chars, hidden_size),
                                                jnp.float32)
    params["dec_b"] = scale * jax.random.normal(k_dec_b, (num_chars,), jnp.float32)
    keys = jax.random.split(k_rest, num_layers * 4)
    for layer in range(num_layers):
        in_dim = num_chars if layer == 0 else hidden_size
        k0, k1, k2, k3 = keys[layer * 4: layer * 4 + 4]
        params[f"w_ih_{layer}"] = scale * jax.random.normal(
            k0, (4 * hidden_size, in_dim), jnp.float32)
        params[f"w_hh_{layer}"] = scale * jax.random.normal(
            k1, (4 * hidden_size, hidden_size), jnp.float32)
        params[f"b_ih_{layer}"] = scale * jax.random.normal(
            k2, (4 * hidden_size,), jnp.float32)
        params[f"b_hh_{layer}"] = scale * jax.random.normal(
            k3, (4 * hidden_size,), jnp.float32)
    return params


if __name__ == "__main__":
    num_chars = 32
    hidden_size = 32
    num_layers = 2
    seq_len = 8
    batch = 2

    key = jax.random.PRNGKey(0)
    k_param, k_ids, k_h, k_c = jax.random.split(key, 4)

    params = init_params(k_param, num_chars, hidden_size, num_layers)
    input_seq = jax.random.randint(k_ids, (seq_len, batch), 0, num_chars,
                                   dtype=jnp.int32)
    h0 = jax.random.normal(k_h, (num_layers, batch, hidden_size), jnp.float32)
    c0 = jax.random.normal(k_c, (num_layers, batch, hidden_size), jnp.float32)

    # Engage the second TensorCore via a batch-parallel grid only on v7x
    # (1 TC/chip on v5e/v6e -> splitting the batch would serialize there).
    num_batch_blocks = 1
    try:
        if "v7" in jax.devices()[0].device_kind.lower() and batch % 2 == 0:
            num_batch_blocks = 2
    except Exception:
        pass

    fwd = functools.partial(rnn_forward, num_layers=num_layers,
                            num_batch_blocks=num_batch_blocks)
    logits, (h_n, c_n) = jax.jit(fwd)(params, input_seq, (h0, c0))
    jax.block_until_ready((logits, h_n, c_n))

    ref_logits, (ref_h, ref_c) = rnn_forward_ref(params, input_seq, (h0, c0),
                                                 num_layers)
    assert logits.shape == (seq_len, batch, num_chars)
    assert h_n.shape == (num_layers, batch, hidden_size)
    assert c_n.shape == (num_layers, batch, hidden_size)
    assert jnp.allclose(logits, ref_logits, atol=2e-3, rtol=2e-3)
    assert jnp.allclose(h_n, ref_h, atol=2e-3, rtol=2e-3)
    assert jnp.allclose(c_n, ref_c, atol=2e-3, rtol=2e-3)

    print("KERNEL_OK")
</pallas_src>

<mosaic_0001>
module attributes {stable_mosaic.version = 11 : i64} {
  func.func @kernel(%arg0: i32, %arg1: memref<2x8x128xf32, #tpu.memory_space<vmem>>, %arg2: memref<32x128xf32, #tpu.memory_space<vmem>>, %arg3: memref<32x128xf32, #tpu.memory_space<vmem>>, %arg4: memref<32x128xf32, #tpu.memory_space<vmem>>, %arg5: memref<1x128xf32, #tpu.memory_space<vmem>>, %arg6: memref<2x2x32xf32, #tpu.memory_space<vmem>>, %arg7: memref<2x2x32xf32, #tpu.memory_space<vmem>>, %arg8: memref<32x32xf32, #tpu.memory_space<vmem>>, %arg9: memref<1x32xf32, #tpu.memory_space<vmem>>, %arg10: memref<2x8x32xf32, #tpu.memory_space<vmem>>, %arg11: memref<2x2x32xf32, #tpu.memory_space<vmem>>, %arg12: memref<2x2x32xf32, #tpu.memory_space<vmem>>) attributes {dimension_semantics = [#tpu.dimension_semantics<parallel>], iteration_bounds = array<i64: 1>, scalar_prefetch = 0 : i64, scratch_operands = 0 : i64, tpu.core_type = #tpu.core_type<tc>, window_params = [{transform_indices = @transform_0, window_bounds = array<i64: 2, 8, 128>}, {pipeline_mode = #tpu.pipeline_mode<synchronous>, transform_indices = @transform_1, window_bounds = array<i64: 32, 128>}, {pipeline_mode = #tpu.pipeline_mode<synchronous>, transform_indices = @transform_2, window_bounds = array<i64: 32, 128>}, {pipeline_mode = #tpu.pipeline_mode<synchronous>, transform_indices = @transform_3, window_bounds = array<i64: 32, 128>}, {pipeline_mode = #tpu.pipeline_mode<synchronous>, transform_indices = @transform_4, window_bounds = array<i64: 1, 128>}, {transform_indices = @transform_5, window_bounds = array<i64: 2, 2, 32>}, {transform_indices = @transform_6, window_bounds = array<i64: 2, 2, 32>}, {pipeline_mode = #tpu.pipeline_mode<synchronous>, transform_indices = @transform_7, window_bounds = array<i64: 32, 32>}, {pipeline_mode = #tpu.pipeline_mode<synchronous>, transform_indices = @transform_8, window_bounds = array<i64: 1, 32>}, {transform_indices = @transform_9, window_bounds = array<i64: 2, 8, 32>}, {transform_indices = @transform_10, window_bounds = array<i64: 2, 2, 32>}, {transform_indices = @transform_11, window_bounds = array<i64: 2, 2, 32>}]} {
    %c0 = arith.constant 0 : index
    %c0_0 = arith.constant 0 : index
    %0 = vector.load %arg2[%c0, %c0_0] : memref<32x128xf32, #tpu.memory_space<vmem>>, vector<32x128xf32>
    %c0_1 = arith.constant 0 : index
    %c0_2 = arith.constant 0 : index
    %1 = vector.load %arg4[%c0_1, %c0_2] : memref<32x128xf32, #tpu.memory_space<vmem>>, vector<32x128xf32>
    %c0_3 = arith.constant 0 : index
    %c0_4 = arith.constant 0 : index
    %2 = vector.load %arg3[%c0_3, %c0_4] : memref<32x128xf32, #tpu.memory_space<vmem>>, vector<32x128xf32>
    %c0_5 = arith.constant 0 : index
    %c0_6 = arith.constant 0 : index
    %3 = vector.load %arg5[%c0_5, %c0_6] : memref<1x128xf32, #tpu.memory_space<vmem>>, vector<1x128xf32>
    %c0_7 = arith.constant 0 : index
    %c0_8 = arith.constant 0 : index
    %4 = vector.load %arg8[%c0_7, %c0_8] : memref<32x32xf32, #tpu.memory_space<vmem>>, vector<32x32xf32>
    %c0_9 = arith.constant 0 : index
    %c0_10 = arith.constant 0 : index
    %5 = vector.load %arg9[%c0_9, %c0_10] : memref<1x32xf32, #tpu.memory_space<vmem>>, vector<1x32xf32>
    %6 = tpu.iota {dimensions = array<i32: 1>} : vector<2x128xi32>
    %c64_i32 = arith.constant 64 : i32
    %7 = vector.broadcast %c64_i32 : i32 to vector<2x128xi32>
    %8 = arith.cmpi sge, %6, %7 : vector<2x128xi32>
    %c96_i32 = arith.constant 96 : i32
    %9 = vector.broadcast %c96_i32 : i32 to vector<2x128xi32>
    %10 = arith.cmpi slt, %6, %9 : vector<2x128xi32>
    %11 = arith.andi %8, %10 : vector<2x128xi1>
    %c0_11 = arith.constant 0 : index
    %c0_12 = arith.constant 0 : index
    %c0_13 = arith.constant 0 : index
    %12 = vector.load %arg6[%c0_11, %c0_12, %c0_13] : memref<2x2x32xf32, #tpu.memory_space<vmem>>, vector<2x2x32xf32>
    %c0_14 = arith.constant 0 : index
    %c0_15 = arith.constant 0 : index
    %c0_16 = arith.constant 0 : index
    %13 = vector.load %arg7[%c0_14, %c0_15, %c0_16] : memref<2x2x32xf32, #tpu.memory_space<vmem>>, vector<2x2x32xf32>
    %14 = vector.extract_strided_slice %12 {offsets = [0, 0, 0], sizes = [2, 1, 32], strides = [1, 1, 1]} : vector<2x2x32xf32> to vector<2x1x32xf32>
    %15 = vector.shape_cast %14 : vector<2x1x32xf32> to vector<2x32xf32>
    %16 = vector.extract_strided_slice %12 {offsets = [0, 1, 0], sizes = [2, 1, 32], strides = [1, 1, 1]} : vector<2x2x32xf32> to vector<2x1x32xf32>
    %17 = vector.shape_cast %16 : vector<2x1x32xf32> to vector<2x32xf32>
    %18 = vector.extract_strided_slice %13 {offsets = [0, 0, 0], sizes = [2, 1, 32], strides = [1, 1, 1]} : vector<2x2x32xf32> to vector<2x1x32xf32>
    %19 = vector.shape_cast %18 : vector<2x1x32xf32> to vector<2x32xf32>
    %20 = vector.extract_strided_slice %13 {offsets = [0, 1, 0], sizes = [2, 1, 32], strides = [1, 1, 1]} : vector<2x2x32xf32> to vector<2x1x32xf32>
    %21 = vector.shape_cast %20 : vector<2x1x32xf32> to vector<2x32xf32>
    %c0_17 = arith.constant 0 : index
    %c0_18 = arith.constant 0 : index
    %c0_19 = arith.constant 0 : index
    %22 = vector.load %arg1[%c0_17, %c0_18, %c0_19] : memref<2x8x128xf32, #tpu.memory_space<vmem>>, vector<2x8x128xf32>
    %cst = arith.constant dense<0.000000e+00> : vector<2x128xf32>
    %23 = tpu.matmul %15, %0, %cst {dimension_numbers = #tpu.dot_dimension_numbers<[1], [0], [0], [1], [0, 0, 1, 1], [], []>} : vector<2x32xf32>, vector<32x128xf32>, vector<2x128xf32> -> vector<2x128xf32>
    %cst_20 = arith.constant dense<0.000000e+00> : vector<2x128xf32>
    %24 = tpu.matmul %17, %1, %cst_20 {dimension_numbers = #tpu.dot_dimension_numbers<[1], [0], [0], [1], [0, 0, 1, 1], [], []>} : vector<2x32xf32>, vector<32x128xf32>, vector<2x128xf32> -> vector<2x128xf32>
    %25 = vector.extract_strided_slice %22 {offsets = [0, 0, 0], sizes = [2, 1, 128], strides = [1, 1, 1]} : vector<2x8x128xf32> to vector<2x1x128xf32>
    %26 = vector.shape_cast %25 : vector<2x1x128xf32> to vector<2x128xf32>
    %27 = arith.addf %26, %23 : vector<2x128xf32>
    %28 = arith.negf %27 : vector<2x128xf32>
    %29 = math.exp %28 : vector<2x128xf32>
    %cst_21 = arith.constant 1.000000e+00 : f32
    %30 = vector.broadcast %cst_21 : f32 to vector<2x128xf32>
    %31 = arith.addf %30, %29 : vector<2x128xf32>
    %32 = arith.divf %30, %31 : vector<2x128xf32>
    %cst_22 = arith.constant 2.000000e+00 : f32
    %33 = vector.broadcast %cst_22 : f32 to vector<2x128xf32>
    %34 = arith.mulf %33, %32 : vector<2x128xf32>
    %cst_23 = arith.constant 1.000000e+00 : f32
    %35 = vector.broadcast %cst_23 : f32 to vector<2x128xf32>
    %36 = arith.subf %34, %35 : vector<2x128xf32>
    %37 = arith.select %11, %36, %32 : vector<2x128xi1>, vector<2x128xf32>
    %38 = vector.extract_strided_slice %37 {offsets = [0, 0], sizes = [2, 32], strides = [1, 1]} : vector<2x128xf32> to vector<2x32xf32>
    %39 = vector.extract_strided_slice %37 {offsets = [0, 32], sizes = [2, 32], strides = [1, 1]} : vector<2x128xf32> to vector<2x32xf32>
    %40 = vector.extract_strided_slice %37 {offsets = [0, 64], sizes = [2, 32], strides = [1, 1]} : vector<2x128xf32> to vector<2x32xf32>
    %41 = vector.extract_strided_slice %37 {offsets = [0, 96], sizes = [2, 32], strides = [1, 1]} : vector<2x128xf32> to vector<2x32xf32>
    %42 = arith.mulf %39, %19 : vector<2x32xf32>
    %43 = arith.mulf %38, %40 : vector<2x32xf32>
    %44 = arith.addf %42, %43 : vector<2x32xf32>
    %45 = math.tanh %44 : vector<2x32xf32>
    %46 = arith.mulf %41, %45 : vector<2x32xf32>
    %cst_24 = arith.constant dense<0.000000e+00> : vector<2x128xf32>
    %47 = tpu.matmul %46, %2, %cst_24 {dimension_numbers = #tpu.dot_dimension_numbers<[1], [0], [0], [1], [0, 0, 1, 1], [], []>} : vector<2x32xf32>, vector<32x128xf32>, vector<2x128xf32> -> vector<2x128xf32>
    %48 = arith.addf %47, %24 : vector<2x128xf32>
    %49 = vector.broadcast %3 : vector<1x128xf32> to vector<2x128xf32>
    %50 = arith.addf %48, %49 : vector<2x128xf32>
    %51 = arith.negf %50 : vector<2x128xf32>
    %52 = math.exp %51 : vector<2x128xf32>
    %cst_25 = arith.constant 1.000000e+00 : f32
    %53 = vector.broadcast %cst_25 : f32 to vector<2x128xf32>
    %54 = arith.addf %53, %52 : vector<2x128xf32>
    %55 = arith.divf %53, %54 : vector<2x128xf32>
    %cst_26 = arith.constant 2.000000e+00 : f32
    %56 = vector.broadcast %cst_26 : f32 to vector<2x128xf32>
    %57 = arith.mulf %56, %55 : vector<2x128xf32>
    %cst_27 = arith.constant 1.000000e+00 : f32
    %58 = vector.broadcast %cst_27 : f32 to vector<2x128xf32>
    %59 = arith.subf %57, %58 : vector<2x128xf32>
    %60 = arith.select %11, %59, %55 : vector<2x128xi1>, vector<2x128xf32>
    %61 = vector.extract_strided_slice %60 {offsets = [0, 0], sizes = [2, 32], strides = [1, 1]} : vector<2x128xf32> to vector<2x32xf32>
    %62 = vector.extract_strided_slice %60 {offsets = [0, 32], sizes = [2, 32], strides = [1, 1]} : vector<2x128xf32> to vector<2x32xf32>
    %63 = vector.extract_strided_slice %60 {offsets = [0, 64], sizes = [2, 32], strides = [1, 1]} : vector<2x128xf32> to vector<2x32xf32>
    %64 = vector.extract_strided_slice %60 {offsets = [0, 96], sizes = [2, 32], strides = [1, 1]} : vector<2x128xf32> to vector<2x32xf32>
    %65 = arith.mulf %62, %21 : vector<2x32xf32>
    %66 = arith.mulf %61, %63 : vector<2x32xf32>
    %67 = arith.addf %65, %66 : vector<2x32xf32>
    %68 = math.tanh %67 : vector<2x32xf32>
    %69 = arith.mulf %64, %68 : vector<2x32xf32>
    %cst_28 = arith.constant dense<0.000000e+00> : vector<2x128xf32>
    %70 = tpu.matmul %46, %0, %cst_28 {dimension_numbers = #tpu.dot_dimension_numbers<[1], [0], [0], [1], [0, 0, 1, 1], [], []>} : vector<2x32xf32>, vector<32x128xf32>, vector<2x128xf32> -> vector<2x128xf32>
    %cst_29 = arith.constant dense<0.000000e+00> : vector<2x128xf32>
    %71 = tpu.matmul %69, %1, %cst_29 {dimension_numbers = #tpu.dot_dimension_numbers<[1], [0], [0], [1], [0, 0, 1, 1], [], []>} : vector<2x32xf32>, vector<32x128xf32>, vector<2x128xf32> -> vector<2x128xf32>
    %72 = vector.extract_strided_slice %22 {offsets = [0, 1, 0], sizes = [2, 1, 128], strides = [1, 1, 1]} : vector<2x8x128xf32> to vector<2x1x128xf32>
    %73 = vector.shape_cast %72 : vector<2x1x128xf32> to vector<2x128xf32>
    %74 = arith.addf %73, %70 : vector<2x128xf32>
    %75 = arith.negf %74 : vector<2x128xf32>
    %76 = math.exp %75 : vector<2x128xf32>
    %cst_30 = arith.constant 1.000000e+00 : f32
    %77 = vector.broadcast %cst_30 : f32 to vector<2x128xf32>
    %78 = arith.addf %77, %76 : vector<2x128xf32>
    %79 = arith.divf %77, %78 : vector<2x128xf32>
    %cst_31 = arith.constant 2.000000e+00 : f32
    %80 = vector.broadcast %cst_31 : f32 to vector<2x128xf32>
    %81 = arith.mulf %80, %79 : vector<2x128xf32>
    %cst_32 = arith.constant 1.000000e+00 : f32
    %82 = vector.broadcast %cst_32 : f32 to vector<2x128xf32>
    %83 = arith.subf %81, %82 : vector<2x128xf32>
    %84 = arith.select %11, %83, %79 : vector<2x128xi1>, vector<2x128xf32>
    %85 = vector.extract_strided_slice %84 {offsets = [0, 0], sizes = [2, 32], strides = [1, 1]} : vector<2x128xf32> to vector<2x32xf32>
    %86 = vector.extract_strided_slice %84 {offsets = [0, 32], sizes = [2, 32], strides = [1, 1]} : vector<2x128xf32> to vector<2x32xf32>
    %87 = vector.extract_strided_slice %84 {offsets = [0, 64], sizes = [2, 32], strides = [1, 1]} : vector<2x128xf32> to vector<2x32xf32>
    %88 = vector.extract_strided_slice %84 {offsets = [0, 96], sizes = [2, 32], strides = [1, 1]} : vector<2x128xf32> to vector<2x32xf32>
    %89 = arith.mulf %86, %44 : vector<2x32xf32>
    %90 = arith.mulf %85, %87 : vector<2x32xf32>
    %91 = arith.addf %89, %90 : vector<2x32xf32>
    %92 = math.tanh %91 : vector<2x32xf32>
    %93 = arith.mulf %88, %92 : vector<2x32xf32>
    %cst_33 = arith.constant dense<0.000000e+00> : vector<2x128xf32>
    %94 = tpu.matmul %93, %2, %cst_33 {dimension_numbers = #tpu.dot_dimension_numbers<[1], [0], [0], [1], [0, 0, 1, 1], [], []>} : vector<2x32xf32>, vector<32x128xf32>, vector<2x128xf32> -> vector<2x128xf32>
    %95 = arith.addf %94, %71 : vector<2x128xf32>
    %96 = vector.broadcast %3 : vector<1x128xf32> to vector<2x128xf32>
    %97 = arith.addf %95, %96 : vector<2x128xf32>
    %98 = arith.negf %97 : vector<2x128xf32>
    %99 = math.exp %98 : vector<2x128xf32>
    %cst_34 = arith.constant 1.000000e+00 : f32
    %100 = vector.broadcast %cst_34 : f32 to vector<2x128xf32>
    %101 = arith.addf %100, %99 : vector<2x128xf32>
    %102 = arith.divf %100, %101 : vector<2x128xf32>
    %cst_35 = arith.constant 2.000000e+00 : f32
    %103 = vector.broadcast %cst_35 : f32 to vector<2x128xf32>
    %104 = arith.mulf %103, %102 : vector<2x128xf32>
    %cst_36 = arith.constant 1.000000e+00 : f32
    %105 = vector.broadcast %cst_36 : f32 to vector<2x128xf32>
    %106 = arith.subf %104, %105 : vector<2x128xf32>
    %107 = arith.select %11, %106, %102 : vector<2x128xi1>, vector<2x128xf32>
    %108 = vector.extract_strided_slice %107 {offsets = [0, 0], sizes = [2, 32], strides = [1, 1]} : vector<2x128xf32> to vector<2x32xf32>
    %109 = vector.extract_strided_slice %107 {offsets = [0, 32], sizes = [2, 32], strides = [1, 1]} : vector<2x128xf32> to vector<2x32xf32>
    %110 = vector.extract_strided_slice %107 {offsets = [0, 64], sizes = [2, 32], strides = [1, 1]} : vector<2x128xf32> to vector<2x32xf32>
    %111 = vector.extract_strided_slice %107 {offsets = [0, 96], sizes = [2, 32], strides = [1, 1]} : vector<2x128xf32> to vector<2x32xf32>
    %112 = arith.mulf %109, %67 : vector<2x32xf32>
    %113 = arith.mulf %108, %110 : vector<2x32xf32>
    %114 = arith.addf %112, %113 : vector<2x32xf32>
    %115 = math.tanh %114 : vector<2x32xf32>
    %116 = arith.mulf %111, %115 : vector<2x32xf32>
    %cst_37 = arith.constant dense<0.000000e+00> : vector<2x128xf32>
    %117 = tpu.matmul %93, %0, %cst_37 {dimension_numbers = #tpu.dot_dimension_numbers<[1], [0], [0], [1], [0, 0, 1, 1], [], []>} : vector<2x32xf32>, vector<32x128xf32>, vector<2x128xf32> -> vector<2x128xf32>
    %cst_38 = arith.constant dense<0.000000e+00> : vector<2x128xf32>
    %118 = tpu.matmul %116, %1, %cst_38 {dimension_numbers = #tpu.dot_dimension_numbers<[1], [0], [0], [1], [0, 0, 1, 1], [], []>} : vector<2x32xf32>, vector<32x128xf32>, vector<2x128xf32> -> vector<2x128xf32>
    %119 = vector.extract_strided_slice %22 {offsets = [0, 2, 0], sizes = [2, 1, 128], strides = [1, 1, 1]} : vector<2x8x128xf32> to vector<2x1x128xf32>
    %120 = vector.shape_cast %119 : vector<2x1x128xf32> to vector<2x128xf32>
    %121 = arith.addf %120, %117 : vector<2x128xf32>
    %122 = arith.negf %121 : vector<2x128xf32>
    %123 = math.exp %122 : vector<2x128xf32>
    %cst_39 = arith.constant 1.000000e+00 : f32
    %124 = vector.broadcast %cst_39 : f32 to vector<2x128xf32>
    %125 = arith.addf %124, %123 : vector<2x128xf32>
    %126 = arith.divf %124, %125 : vector<2x128xf32>
    %cst_40 = arith.constant 2.000000e+00 : f32
    %127 = vector.broadcast %cst_40 : f32 to vector<2x128xf32>
    %128 = arith.mulf %127, %126 : vector<2x128xf32>
    %cst_41 = arith.constant 1.000000e+00 : f32
    %129 = vector.broadcast %cst_41 : f32 to vector<2x128xf32>
    %130 = arith.subf %128, %129 : vector<2x128xf32>
    %131 = arith.select %11, %130, %126 : vector<2x128xi1>, vector<2x128xf32>
    %132 = vector.extract_strided_slice %131 {offsets = [0, 0], sizes = [2, 32], strides = [1, 1]} : vector<2x128xf32> to vector<2x32xf32>
    %133 = vector.extract_strided_slice %131 {offsets = [0, 32], sizes = [2, 32], strides = [1, 1]} : vector<2x128xf32> to vector<2x32xf32>
    %134 = vector.extract_strided_slice %131 {offsets = [0, 64], sizes = [2, 32], strides = [1, 1]} : vector<2x128xf32> to vector<2x32xf32>
    %135 = vector.extract_strided_slice %131 {offsets = [0, 96], sizes = [2, 32], strides = [1, 1]} : vector<2x128xf32> to vector<2x32xf32>
    %136 = arith.mulf %133, %91 : vector<2x32xf32>
    %137 = arith.mulf %132, %134 : vector<2x32xf32>
    %138 = arith.addf %136, %137 : vector<2x32xf32>
    %139 = math.tanh %138 : vector<2x32xf32>
    %140 = arith.mulf %135, %139 : vector<2x32xf32>
    %cst_42 = arith.constant dense<0.000000e+00> : vector<2x128xf32>
    %141 = tpu.matmul %140, %2, %cst_42 {dimension_numbers = #tpu.dot_dimension_numbers<[1], [0], [0], [1], [0, 0, 1, 1], [], []>} : vector<2x32xf32>, vector<32x128xf32>, vector<2x128xf32> -> vector<2x128xf32>
    %142 = arith.addf %141, %118 : vector<2x128xf32>
    %143 = vector.broadcast %3 : vector<1x128xf32> to vector<2x128xf32>
    %144 = arith.addf %142, %143 : vector<2x128xf32>
    %145 = arith.negf %144 : vector<2x128xf32>
    %146 = math.exp %145 : vector<2x128xf32>
    %cst_43 = arith.constant 1.000000e+00 : f32
    %147 = vector.broadcast %cst_43 : f32 to vector<2x128xf32>
    %148 = arith.addf %147, %146 : vector<2x128xf32>
    %149 = arith.divf %147, %148 : vector<2x128xf32>
    %cst_44 = arith.constant 2.000000e+00 : f32
    %150 = vector.broadcast %cst_44 : f32 to vector<2x128xf32>
    %151 = arith.mulf %150, %149 : vector<2x128xf32>
    %cst_45 = arith.constant 1.000000e+00 : f32
    %152 = vector.broadcast %cst_45 : f32 to vector<2x128xf32>
    %153 = arith.subf %151, %152 : vector<2x128xf32>
    %154 = arith.select %11, %153, %149 : vector<2x128xi1>, vector<2x128xf32>
    %155 = vector.extract_strided_slice %154 {offsets = [0, 0], sizes = [2, 32], strides = [1, 1]} : vector<2x128xf32> to vector<2x32xf32>
    %156 = vector.extract_strided_slice %154 {offsets = [0, 32], sizes = [2, 32], strides = [1, 1]} : vector<2x128xf32> to vector<2x32xf32>
    %157 = vector.extract_strided_slice %154 {offsets = [0, 64], sizes = [2, 32], strides = [1, 1]} : vector<2x128xf32> to vector<2x32xf32>
    %158 = vector.extract_strided_slice %154 {offsets = [0, 96], sizes = [2, 32], strides = [1, 1]} : vector<2x128xf32> to vector<2x32xf32>
    %159 = arith.mulf %156, %114 : vector<2x32xf32>
    %160 = arith.mulf %155, %157 : vector<2x32xf32>
    %161 = arith.addf %159, %160 : vector<2x32xf32>
    %162 = math.tanh %161 : vector<2x32xf32>
    %163 = arith.mulf %158, %162 : vector<2x32xf32>
    %cst_46 = arith.constant dense<0.000000e+00> : vector<2x128xf32>
    %164 = tpu.matmul %140, %0, %cst_46 {dimension_numbers = #tpu.dot_dimension_numbers<[1], [0], [0], [1], [0, 0, 1, 1], [], []>} : vector<2x32xf32>, vector<32x128xf32>, vector<2x128xf32> -> vector<2x128xf32>
    %cst_47 = arith.constant dense<0.000000e+00> : vector<2x128xf32>
    %165 = tpu.matmul %163, %1, %cst_47 {dimension_numbers = #tpu.dot_dimension_numbers<[1], [0], [0], [1], [0, 0, 1, 1], [], []>} : vector<2x32xf32>, vector<32x128xf32>, vector<2x128xf32> -> vector<2x128xf32>
    %166 = vector.extract_strided_slice %22 {offsets = [0, 3, 0], sizes = [2, 1, 128], strides = [1, 1, 1]} : vector<2x8x128xf32> to vector<2x1x128xf32>
    %167 = vector.shape_cast %166 : vector<2x1x128xf32> to vector<2x128xf32>
    %168 = arith.addf %167, %164 : vector<2x128xf32>
    %169 = arith.negf %168 : vector<2x128xf32>
    %170 = math.exp %169 : vector<2x128xf32>
    %cst_48 = arith.constant 1.000000e+00 : f32
    %171 = vector.broadcast %cst_48 : f32 to vector<2x128xf32>
    %172 = arith.addf %171, %170 : vector<2x128xf32>
    %173 = arith.divf %171, %172 : vector<2x128xf32>
    %cst_49 = arith.constant 2.000000e+00 : f32
    %174 = vector.broadcast %cst_49 : f32 to vector<2x128xf32>
    %175 = arith.mulf %174, %173 : vector<2x128xf32>
    %cst_50 = arith.constant 1.000000e+00 : f32
    %176 = vector.broadcast %cst_50 : f32 to vector<2x128xf32>
    %177 = arith.subf %175, %176 : vector<2x128xf32>
    %178 = arith.select %11, %177, %173 : vector<2x128xi1>, vector<2x128xf32>
    %179 = vector.extract_strided_slice %178 {offsets = [0, 0], sizes = [2, 32], strides = [1, 1]} : vector<2x128xf32> to vector<2x32xf32>
    %180 = vector.extract_strided_slice %178 {offsets = [0, 32], sizes = [2, 32], strides = [1, 1]} : vector<2x128xf32> to vector<2x32xf32>
    %181 = vector.extract_strided_slice %178 {offsets = [0, 64], sizes = [2, 32], strides = [1, 1]} : vector<2x128xf32> to vector<2x32xf32>
    %182 = vector.extract_strided_slice %178 {offsets = [0, 96], sizes = [2, 32], strides = [1, 1]} : vector<2x128xf32> to vector<2x32xf32>
    %183 = arith.mulf %180, %138 : vector<2x32xf32>
    %184 = arith.mulf %179, %181 : vector<2x32xf32>
    %185 = arith.addf %183, %184 : vector<2x32xf32>
    %186 = math.tanh %185 : vector<2x32xf32>
    %187 = arith.mulf %182, %186 : vector<2x32xf32>
    %cst_51 = arith.constant dense<0.000000e+00> : vector<2x128xf32>
    %188 = tpu.matmul %187, %2, %cst_51 {dimension_numbers = #tpu.dot_dimension_numbers<[1], [0], [0], [1], [0, 0, 1, 1], [], []>} : vector<2x32xf32>, vector<32x128xf32>, vector<2x128xf32> -> vector<2x128xf32>
    %189 = arith.addf %188, %165 : vector<2x128xf32>
    %190 = vector.broadcast %3 : vector<1x128xf32> to vector<2x128xf32>
    %191 = arith.addf %189, %190 : vector<2x128xf32>
    %192 = arith.negf %191 : vector<2x128xf32>
    %193 = math.exp %192 : vector<2x128xf32>
    %cst_52 = arith.constant 1.000000e+00 : f32
    %194 = vector.broadcast %cst_52 : f32 to vector<2x128xf32>
    %195 = arith.addf %194, %193 : vector<2x128xf32>
    %196 = arith.divf %194, %195 : vector<2x128xf32>
    %cst_53 = arith.constant 2.000000e+00 : f32
    %197 = vector.broadcast %cst_53 : f32 to vector<2x128xf32>
    %198 = arith.mulf %197, %196 : vector<2x128xf32>
    %cst_54 = arith.constant 1.000000e+00 : f32
    %199 = vector.broadcast %cst_54 : f32 to vector<2x128xf32>
    %200 = arith.subf %198, %199 : vector<2x128xf32>
    %201 = arith.select %11, %200, %196 : vector<2x128xi1>, vector<2x128xf32>
    %202 = vector.extract_strided_slice %201 {offsets = [0, 0], sizes = [2, 32], strides = [1, 1]} : vector<2x128xf32> to vector<2x32xf32>
    %203 = vector.extract_strided_slice %201 {offsets = [0, 32], sizes = [2, 32], strides = [1, 1]} : vector<2x128xf32> to vector<2x32xf32>
    %204 = vector.extract_strided_slice %201 {offsets = [0, 64], sizes = [2, 32], strides = [1, 1]} : vector<2x128xf32> to vector<2x32xf32>
    %205 = vector.extract_strided_slice %201 {offsets = [0, 96], sizes = [2, 32], strides = [1, 1]} : vector<2x128xf32> to vector<2x32xf32>
    %206 = arith.mulf %203, %161 : vector<2x32xf32>
    %207 = arith.mulf %202, %204 : vector<2x32xf32>
    %208 = arith.addf %206, %207 : vector<2x32xf32>
    %209 = math.tanh %208 : vector<2x32xf32>
    %210 = arith.mulf %205, %209 : vector<2x32xf32>
    %cst_55 = arith.constant dense<0.000000e+00> : vector<2x128xf32>
    %211 = tpu.matmul %187, %0, %cst_55 {dimension_numbers = #tpu.dot_dimension_numbers<[1], [0], [0], [1], [0, 0, 1, 1], [], []>} : vector<2x32xf32>, vector<32x128xf32>, vector<2x128xf32> -> vector<2x128xf32>
    %cst_56 = arith.constant dense<0.000000e+00> : vector<2x128xf32>
    %212 = tpu.matmul %210, %1, %cst_56 {dimension_numbers = #tpu.dot_dimension_numbers<[1], [0], [0], [1], [0, 0, 1, 1], [], []>} : vector<2x32xf32>, vector<32x128xf32>, vector<2x128xf32> -> vector<2x128xf32>
    %213 = vector.extract_strided_slice %22 {offsets = [0, 4, 0], sizes = [2, 1, 128], strides = [1, 1, 1]} : vector<2x8x128xf32> to vector<2x1x128xf32>
    %214 = vector.shape_cast %213 : vector<2x1x128xf32> to vector<2x128xf32>
    %215 = arith.addf %214, %211 : vector<2x128xf32>
    %216 = arith.negf %215 : vector<2x128xf32>
    %217 = math.exp %216 : vector<2x128xf32>
    %cst_57 = arith.constant 1.000000e+00 : f32
    %218 = vector.broadcast %cst_57 : f32 to vector<2x128xf32>
    %219 = arith.addf %218, %217 : vector<2x128xf32>
    %220 = arith.divf %218, %219 : vector<2x128xf32>
    %cst_58 = arith.constant 2.000000e+00 : f32
    %221 = vector.broadcast %cst_58 : f32 to vector<2x128xf32>
    %222 = arith.mulf %221, %220 : vector<2x128xf32>
    %cst_59 = arith.constant 1.000000e+00 : f32
    %223 = vector.broadcast %cst_59 : f32 to vector<2x128xf32>
    %224 = arith.subf %222, %223 : vector<2x128xf32>
    %225 = arith.select %11, %224, %220 : vector<2x128xi1>, vector<2x128xf32>
    %226 = vector.extract_strided_slice %225 {offsets = [0, 0], sizes = [2, 32], strides = [1, 1]} : vector<2x128xf32> to vector<2x32xf32>
    %227 = vector.extract_strided_slice %225 {offsets = [0, 32], sizes = [2, 32], strides = [1, 1]} : vector<2x128xf32> to vector<2x32xf32>
    %228 = vector.extract_strided_slice %225 {offsets = [0, 64], sizes = [2, 32], strides = [1, 1]} : vector<2x128xf32> to vector<2x32xf32>
    %229 = vector.extract_strided_slice %225 {offsets = [0, 96], sizes = [2, 32], strides = [1, 1]} : vector<2x128xf32> to vector<2x32xf32>
    %230 = arith.mulf %227, %185 : vector<2x32xf32>
    %231 = arith.mulf %226, %228 : vector<2x32xf32>
    %232 = arith.addf %230, %231 : vector<2x32xf32>
    %233 = math.tanh %232 : vector<2x32xf32>
    %234 = arith.mulf %229, %233 : vector<2x32xf32>
    %cst_60 = arith.constant dense<0.000000e+00> : vector<2x128xf32>
    %235 = tpu.matmul %234, %2, %cst_60 {dimension_numbers = #tpu.dot_dimension_numbers<[1], [0], [0], [1], [0, 0, 1, 1], [], []>} : vector<2x32xf32>, vector<32x128xf32>, vector<2x128xf32> -> vector<2x128xf32>
    %236 = arith.addf %235, %212 : vector<2x128xf32>
    %237 = vector.broadcast %3 : vector<1x128xf32> to vector<2x128xf32>
    %238 = arith.addf %236, %237 : vector<2x128xf32>
    %239 = arith.negf %238 : vector<2x128xf32>
    %240 = math.exp %239 : vector<2x128xf32>
    %cst_61 = arith.constant 1.000000e+00 : f32
    %241 = vector.broadcast %cst_61 : f32 to vector<2x128xf32>
    %242 = arith.addf %241, %240 : vector<2x128xf32>
    %243 = arith.divf %241, %242 : vector<2x128xf32>
    %cst_62 = arith.constant 2.000000e+00 : f32
    %244 = vector.broadcast %cst_62 : f32 to vector<2x128xf32>
    %245 = arith.mulf %244, %243 : vector<2x128xf32>
    %cst_63 = arith.constant 1.000000e+00 : f32
    %246 = vector.broadcast %cst_63 : f32 to vector<2x128xf32>
    %247 = arith.subf %245, %246 : vector<2x128xf32>
    %248 = arith.select %11, %247, %243 : vector<2x128xi1>, vector<2x128xf32>
    %249 = vector.extract_strided_slice %248 {offsets = [0, 0], sizes = [2, 32], strides = [1, 1]} : vector<2x128xf32> to vector<2x32xf32>
    %250 = vector.extract_strided_slice %248 {offsets = [0, 32], sizes = [2, 32], strides = [1, 1]} : vector<2x128xf32> to vector<2x32xf32>
    %251 = vector.extract_strided_slice %248 {offsets = [0, 64], sizes = [2, 32], strides = [1, 1]} : vector<2x128xf32> to vector<2x32xf32>
    %252 = vector.extract_strided_slice %248 {offsets = [0, 96], sizes = [2, 32], strides = [1, 1]} : vector<2x128xf32> to vector<2x32xf32>
    %253 = arith.mulf %250, %208 : vector<2x32xf32>
    %254 = arith.mulf %249, %251 : vector<2x32xf32>
    %255 = arith.addf %253, %254 : vector<2x32xf32>
    %256 = math.tanh %255 : vector<2x32xf32>
    %257 = arith.mulf %252, %256 : vector<2x32xf32>
    %cst_64 = arith.constant dense<0.000000e+00> : vector<2x128xf32>
    %258 = tpu.matmul %234, %0, %cst_64 {dimension_numbers = #tpu.dot_dimension_numbers<[1], [0], [0], [1], [0, 0, 1, 1], [], []>} : vector<2x32xf32>, vector<32x128xf32>, vector<2x128xf32> -> vector<2x128xf32>
    %cst_65 = arith.constant dense<0.000000e+00> : vector<2x128xf32>
    %259 = tpu.matmul %257, %1, %cst_65 {dimension_numbers = #tpu.dot_dimension_numbers<[1], [0], [0], [1], [0, 0, 1, 1], [], []>} : vector<2x32xf32>, vector<32x128xf32>, vector<2x128xf32> -> vector<2x128xf32>
    %260 = vector.extract_strided_slice %22 {offsets = [0, 5, 0], sizes = [2, 1, 128], strides = [1, 1, 1]} : vector<2x8x128xf32> to vector<2x1x128xf32>
    %261 = vector.shape_cast %260 : vector<2x1x128xf32> to vector<2x128xf32>
    %262 = arith.addf %261, %258 : vector<2x128xf32>
    %263 = arith.negf %262 : vector<2x128xf32>
    %264 = math.exp %263 : vector<2x128xf32>
    %cst_66 = arith.constant 1.000000e+00 : f32
    %265 = vector.broadcast %cst_66 : f32 to vector<2x128xf32>
    %266 = arith.addf %265, %264 : vector<2x128xf32>
    %267 = arith.divf %265, %266 : vector<2x128xf32>
    %cst_67 = arith.constant 2.000000e+00 : f32
    %268 = vector.broadcast %cst_67 : f32 to vector<2x128xf32>
    %269 = arith.mulf %268, %267 : vector<2x128xf32>
    %cst_68 = arith.constant 1.000000e+00 : f32
    %270 = vector.broadcast %cst_68 : f32 to vector<2x128xf32>
    %271 = arith.subf %269, %270 : vector<2x128xf32>
    %272 = arith.select %11, %271, %267 : vector<2x128xi1>, vector<2x128xf32>
    %273 = vector.extract_strided_slice %272 {offsets = [0, 0], sizes = [2, 32], strides = [1, 1]} : vector<2x128xf32> to vector<2x32xf32>
    %274 = vector.extract_strided_slice %272 {offsets = [0, 32], sizes = [2, 32], strides = [1, 1]} : vector<2x128xf32> to vector<2x32xf32>
    %275 = vector.extract_strided_slice %272 {offsets = [0, 64], sizes = [2, 32], strides = [1, 1]} : vector<2x128xf32> to vector<2x32xf32>
    %276 = vector.extract_strided_slice %272 {offsets = [0, 96], sizes = [2, 32], strides = [1, 1]} : vector<2x128xf32> to vector<2x32xf32>
    %277 = arith.mulf %274, %232 : vector<2x32xf32>
    %278 = arith.mulf %273, %275 : vector<2x32xf32>
    %279 = arith.addf %277, %278 : vector<2x32xf32>
    %280 = math.tanh %279 : vector<2x32xf32>
    %281 = arith.mulf %276, %280 : vector<2x32xf32>
    %cst_69 = arith.constant dense<0.000000e+00> : vector<2x128xf32>
    %282 = tpu.matmul %281, %2, %cst_69 {dimension_numbers = #tpu.dot_dimension_numbers<[1], [0], [0], [1], [0, 0, 1, 1], [], []>} : vector<2x32xf32>, vector<32x128xf32>, vector<2x128xf32> -> vector<2x128xf32>
    %283 = arith.addf %282, %259 : vector<2x128xf32>
    %284 = vector.broadcast %3 : vector<1x128xf32> to vector<2x128xf32>
    %285 = arith.addf %283, %284 : vector<2x128xf32>
    %286 = arith.negf %285 : vector<2x128xf32>
    %287 = math.exp %286 : vector<2x128xf32>
    %cst_70 = arith.constant 1.000000e+00 : f32
    %288 = vector.broadcast %cst_70 : f32 to vector<2x128xf32>
    %289 = arith.addf %288, %287 : vector<2x128xf32>
    %290 = arith.divf %288, %289 : vector<2x128xf32>
    %cst_71 = arith.constant 2.000000e+00 : f32
    %291 = vector.broadcast %cst_71 : f32 to vector<2x128xf32>
    %292 = arith.mulf %291, %290 : vector<2x128xf32>
    %cst_72 = arith.constant 1.000000e+00 : f32
    %293 = vector.broadcast %cst_72 : f32 to vector<2x128xf32>
    %294 = arith.subf %292, %293 : vector<2x128xf32>
    %295 = arith.select %11, %294, %290 : vector<2x128xi1>, vector<2x128xf32>
    %296 = vector.extract_strided_slice %295 {offsets = [0, 0], sizes = [2, 32], strides = [1, 1]} : vector<2x128xf32> to vector<2x32xf32>
    %297 = vector.extract_strided_slice %295 {offsets = [0, 32], sizes = [2, 32], strides = [1, 1]} : vector<2x128xf32> to vector<2x32xf32>
    %298 = vector.extract_strided_slice %295 {offsets = [0, 64], sizes = [2, 32], strides = [1, 1]} : vector<2x128xf32> to vector<2x32xf32>
    %299 = vector.extract_strided_slice %295 {offsets = [0, 96], sizes = [2, 32], strides = [1, 1]} : vector<2x128xf32> to vector<2x32xf32>
    %300 = arith.mulf %297, %255 : vector<2x32xf32>
    %301 = arith.mulf %296, %298 : vector<2x32xf32>
    %302 = arith.addf %300, %301 : vector<2x32xf32>
    %303 = math.tanh %302 : vector<2x32xf32>
    %304 = arith.mulf %299, %303 : vector<2x32xf32>
    %cst_73 = arith.constant dense<0.000000e+00> : vector<2x128xf32>
    %305 = tpu.matmul %281, %0, %cst_73 {dimension_numbers = #tpu.dot_dimension_numbers<[1], [0], [0], [1], [0, 0, 1, 1], [], []>} : vector<2x32xf32>, vector<32x128xf32>, vector<2x128xf32> -> vector<2x128xf32>
    %cst_74 = arith.constant dense<0.000000e+00> : vector<2x128xf32>
    %306 = tpu.matmul %304, %1, %cst_74 {dimension_numbers = #tpu.dot_dimension_numbers<[1], [0], [0], [1], [0, 0, 1, 1], [], []>} : vector<2x32xf32>, vector<32x128xf32>, vector<2x128xf32> -> vector<2x128xf32>
    %307 = vector.extract_strided_slice %22 {offsets = [0, 6, 0], sizes = [2, 1, 128], strides = [1, 1, 1]} : vector<2x8x128xf32> to vector<2x1x128xf32>
    %308 = vector.shape_cast %307 : vector<2x1x128xf32> to vector<2x128xf32>
    %309 = arith.addf %308, %305 : vector<2x128xf32>
    %310 = arith.negf %309 : vector<2x128xf32>
    %311 = math.exp %310 : vector<2x128xf32>
    %cst_75 = arith.constant 1.000000e+00 : f32
    %312 = vector.broadcast %cst_75 : f32 to vector<2x128xf32>
    %313 = arith.addf %312, %311 : vector<2x128xf32>
    %314 = arith.divf %312, %313 : vector<2x128xf32>
    %cst_76 = arith.constant 2.000000e+00 : f32
    %315 = vector.broadcast %cst_76 : f32 to vector<2x128xf32>
    %316 = arith.mulf %315, %314 : vector<2x128xf32>
    %cst_77 = arith.constant 1.000000e+00 : f32
    %317 = vector.broadcast %cst_77 : f32 to vector<2x128xf32>
    %318 = arith.subf %316, %317 : vector<2x128xf32>
    %319 = arith.select %11, %318, %314 : vector<2x128xi1>, vector<2x128xf32>
    %320 = vector.extract_strided_slice %319 {offsets = [0, 0], sizes = [2, 32], strides = [1, 1]} : vector<2x128xf32> to vector<2x32xf32>
    %321 = vector.extract_strided_slice %319 {offsets = [0, 32], sizes = [2, 32], strides = [1, 1]} : vector<2x128xf32> to vector<2x32xf32>
    %322 = vector.extract_strided_slice %319 {offsets = [0, 64], sizes = [2, 32], strides = [1, 1]} : vector<2x128xf32> to vector<2x32xf32>
    %323 = vector.extract_strided_slice %319 {offsets = [0, 96], sizes = [2, 32], strides = [1, 1]} : vector<2x128xf32> to vector<2x32xf32>
    %324 = arith.mulf %321, %279 : vector<2x32xf32>
    %325 = arith.mulf %320, %322 : vector<2x32xf32>
    %326 = arith.addf %324, %325 : vector<2x32xf32>
    %327 = math.tanh %326 : vector<2x32xf32>
    %328 = arith.mulf %323, %327 : vector<2x32xf32>
    %cst_78 = arith.constant dense<0.000000e+00> : vector<2x128xf32>
    %329 = tpu.matmul %328, %2, %cst_78 {dimension_numbers = #tpu.dot_dimension_numbers<[1], [0], [0], [1], [0, 0, 1, 1], [], []>} : vector<2x32xf32>, vector<32x128xf32>, vector<2x128xf32> -> vector<2x128xf32>
    %330 = arith.addf %329, %306 : vector<2x128xf32>
    %331 = vector.broadcast %3 : vector<1x128xf32> to vector<2x128xf32>
    %332 = arith.addf %330, %331 : vector<2x128xf32>
    %333 = arith.negf %332 : vector<2x128xf32>
    %334 = math.exp %333 : vector<2x128xf32>
    %cst_79 = arith.constant 1.000000e+00 : f32
    %335 = vector.broadcast %cst_79 : f32 to vector<2x128xf32>
    %336 = arith.addf %335, %334 : vector<2x128xf32>
    %337 = arith.divf %335, %336 : vector<2x128xf32>
    %cst_80 = arith.constant 2.000000e+00 : f32
    %338 = vector.broadcast %cst_80 : f32 to vector<2x128xf32>
    %339 = arith.mulf %338, %337 : vector<2x128xf32>
    %cst_81 = arith.constant 1.000000e+00 : f32
    %340 = vector.broadcast %cst_81 : f32 to vector<2x128xf32>
    %341 = arith.subf %339, %340 : vector<2x128xf32>
    %342 = arith.select %11, %341, %337 : vector<2x128xi1>, vector<2x128xf32>
    %343 = vector.extract_strided_slice %342 {offsets = [0, 0], sizes = [2, 32], strides = [1, 1]} : vector<2x128xf32> to vector<2x32xf32>
    %344 = vector.extract_strided_slice %342 {offsets = [0, 32], sizes = [2, 32], strides = [1, 1]} : vector<2x128xf32> to vector<2x32xf32>
    %345 = vector.extract_strided_slice %342 {offsets = [0, 64], sizes = [2, 32], strides = [1, 1]} : vector<2x128xf32> to vector<2x32xf32>
    %346 = vector.extract_strided_slice %342 {offsets = [0, 96], sizes = [2, 32], strides = [1, 1]} : vector<2x128xf32> to vector<2x32xf32>
    %347 = arith.mulf %344, %302 : vector<2x32xf32>
    %348 = arith.mulf %343, %345 : vector<2x32xf32>
    %349 = arith.addf %347, %348 : vector<2x32xf32>
    %350 = math.tanh %349 : vector<2x32xf32>
    %351 = arith.mulf %346, %350 : vector<2x32xf32>
    %cst_82 = arith.constant dense<0.000000e+00> : vector<2x128xf32>
    %352 = tpu.matmul %328, %0, %cst_82 {dimension_numbers = #tpu.dot_dimension_numbers<[1], [0], [0], [1], [0, 0, 1, 1], [], []>} : vector<2x32xf32>, vector<32x128xf32>, vector<2x128xf32> -> vector<2x128xf32>
    %cst_83 = arith.constant dense<0.000000e+00> : vector<2x128xf32>
    %353 = tpu.matmul %351, %1, %cst_83 {dimension_numbers = #tpu.dot_dimension_numbers<[1], [0], [0], [1], [0, 0, 1, 1], [], []>} : vector<2x32xf32>, vector<32x128xf32>, vector<2x128xf32> -> vector<2x128xf32>
    %354 = vector.extract_strided_slice %22 {offsets = [0, 7, 0], sizes = [2, 1, 128], strides = [1, 1, 1]} : vector<2x8x128xf32> to vector<2x1x128xf32>
    %355 = vector.shape_cast %354 : vector<2x1x128xf32> to vector<2x128xf32>
    %356 = arith.addf %355, %352 : vector<2x128xf32>
    %357 = arith.negf %356 : vector<2x128xf32>
    %358 = math.exp %357 : vector<2x128xf32>
    %cst_84 = arith.constant 1.000000e+00 : f32
    %359 = vector.broadcast %cst_84 : f32 to vector<2x128xf32>
    %360 = arith.addf %359, %358 : vector<2x128xf32>
    %361 = arith.divf %359, %360 : vector<2x128xf32>
    %cst_85 = arith.constant 2.000000e+00 : f32
    %362 = vector.broadcast %cst_85 : f32 to vector<2x128xf32>
    %363 = arith.mulf %362, %361 : vector<2x128xf32>
    %cst_86 = arith.constant 1.000000e+00 : f32
    %364 = vector.broadcast %cst_86 : f32 to vector<2x128xf32>
    %365 = arith.subf %363, %364 : vector<2x128xf32>
    %366 = arith.select %11, %365, %361 : vector<2x128xi1>, vector<2x128xf32>
    %367 = vector.extract_strided_slice %366 {offsets = [0, 0], sizes = [2, 32], strides = [1, 1]} : vector<2x128xf32> to vector<2x32xf32>
    %368 = vector.extract_strided_slice %366 {offsets = [0, 32], sizes = [2, 32], strides = [1, 1]} : vector<2x128xf32> to vector<2x32xf32>
    %369 = vector.extract_strided_slice %366 {offsets = [0, 64], sizes = [2, 32], strides = [1, 1]} : vector<2x128xf32> to vector<2x32xf32>
    %370 = vector.extract_strided_slice %366 {offsets = [0, 96], sizes = [2, 32], strides = [1, 1]} : vector<2x128xf32> to vector<2x32xf32>
    %371 = arith.mulf %368, %326 : vector<2x32xf32>
    %372 = arith.mulf %367, %369 : vector<2x32xf32>
    %373 = arith.addf %371, %372 : vector<2x32xf32>
    %374 = math.tanh %373 : vector<2x32xf32>
    %375 = arith.mulf %370, %374 : vector<2x32xf32>
    %cst_87 = arith.constant dense<0.000000e+00> : vector<2x128xf32>
    %376 = tpu.matmul %375, %2, %cst_87 {dimension_numbers = #tpu.dot_dimension_numbers<[1], [0], [0], [1], [0, 0, 1, 1], [], []>} : vector<2x32xf32>, vector<32x128xf32>, vector<2x128xf32> -> vector<2x128xf32>
    %377 = arith.addf %376, %353 : vector<2x128xf32>
    %378 = vector.broadcast %3 : vector<1x128xf32> to vector<2x128xf32>
    %379 = arith.addf %377, %378 : vector<2x128xf32>
    %380 = arith.negf %379 : vector<2x128xf32>
    %381 = math.exp %380 : vector<2x128xf32>
    %cst_88 = arith.constant 1.000000e+00 : f32
    %382 = vector.broadcast %cst_88 : f32 to vector<2x128xf32>
    %383 = arith.addf %382, %381 : vector<2x128xf32>
    %384 = arith.divf %382, %383 : vector<2x128xf32>
    %cst_89 = arith.constant 2.000000e+00 : f32
    %385 = vector.broadcast %cst_89 : f32 to vector<2x128xf32>
    %386 = arith.mulf %385, %384 : vector<2x128xf32>
    %cst_90 = arith.constant 1.000000e+00 : f32
    %387 = vector.broadcast %cst_90 : f32 to vector<2x128xf32>
    %388 = arith.subf %386, %387 : vector<2x128xf32>
    %389 = arith.select %11, %388, %384 : vector<2x128xi1>, vector<2x128xf32>
    %390 = vector.extract_strided_slice %389 {offsets = [0, 0], sizes = [2, 32], strides = [1, 1]} : vector<2x128xf32> to vector<2x32xf32>
    %391 = vector.extract_strided_slice %389 {offsets = [0, 32], sizes = [2, 32], strides = [1, 1]} : vector<2x128xf32> to vector<2x32xf32>
    %392 = vector.extract_strided_slice %389 {offsets = [0, 64], sizes = [2, 32], strides = [1, 1]} : vector<2x128xf32> to vector<2x32xf32>
    %393 = vector.extract_strided_slice %389 {offsets = [0, 96], sizes = [2, 32], strides = [1, 1]} : vector<2x128xf32> to vector<2x32xf32>
    %394 = arith.mulf %391, %349 : vector<2x32xf32>
    %395 = arith.mulf %390, %392 : vector<2x32xf32>
    %396 = arith.addf %394, %395 : vector<2x32xf32>
    %397 = math.tanh %396 : vector<2x32xf32>
    %398 = arith.mulf %393, %397 : vector<2x32xf32>
    %399 = vector.shape_cast %69 : vector<2x32xf32> to vector<2x1x32xf32>
    %400 = vector.shape_cast %116 : vector<2x32xf32> to vector<2x1x32xf32>
    %401 = vector.shape_cast %163 : vector<2x32xf32> to vector<2x1x32xf32>
    %402 = vector.shape_cast %210 : vector<2x32xf32> to vector<2x1x32xf32>
    %403 = vector.shape_cast %257 : vector<2x32xf32> to vector<2x1x32xf32>
    %404 = vector.shape_cast %304 : vector<2x32xf32> to vector<2x1x32xf32>
    %405 = vector.shape_cast %351 : vector<2x32xf32> to vector<2x1x32xf32>
    %406 = vector.shape_cast %398 : vector<2x32xf32> to vector<2x1x32xf32>
    %407 = tpu.concatenate %399, %400, %401, %402, %403, %404, %405, %406 in 1 : vector<2x1x32xf32>, vector<2x1x32xf32>, vector<2x1x32xf32>, vector<2x1x32xf32>, vector<2x1x32xf32>, vector<2x1x32xf32>, vector<2x1x32xf32>, vector<2x1x32xf32> -> vector<2x8x32xf32>
    %408 = vector.shape_cast %407 : vector<2x8x32xf32> to vector<16x32xf32>
    %cst_91 = arith.constant dense<0.000000e+00> : vector<16x32xf32>
    %409 = tpu.matmul %408, %4, %cst_91 {dimension_numbers = #tpu.dot_dimension_numbers<[1], [0], [0], [1], [0, 0, 1, 1], [], []>} : vector<16x32xf32>, vector<32x32xf32>, vector<16x32xf32> -> vector<16x32xf32>
    %410 = vector.broadcast %5 : vector<1x32xf32> to vector<16x32xf32>
    %411 = arith.addf %409, %410 : vector<16x32xf32>
    %412 = vector.shape_cast %411 : vector<16x32xf32> to vector<2x8x32xf32>
    %c0_92 = arith.constant 0 : index
    %c0_93 = arith.constant 0 : index
    %c0_94 = arith.constant 0 : index
    %413 = vector.load %arg10[%c0_92, %c0_93, %c0_94] : memref<2x8x32xf32, #tpu.memory_space<vmem>>, vector<2x8x32xf32>
    tpu.vector_store %arg10[%c0_92, %c0_93, %c0_94], %412 {strides = array<i32>} : memref<2x8x32xf32, #tpu.memory_space<vmem>>, vector<2x8x32xf32>,
    %414 = vector.shape_cast %375 : vector<2x32xf32> to vector<2x1x32xf32>
    %415 = vector.shape_cast %398 : vector<2x32xf32> to vector<2x1x32xf32>
    %416 = tpu.concatenate %414, %415 in 1 : vector<2x1x32xf32>, vector<2x1x32xf32> -> vector<2x2x32xf32>
    %c0_95 = arith.constant 0 : index
    %c0_96 = arith.constant 0 : index
    %c0_97 = arith.constant 0 : index
    %417 = vector.load %arg11[%c0_95, %c0_96, %c0_97] : memref<2x2x32xf32, #tpu.memory_space<vmem>>, vector<2x2x32xf32>
    tpu.vector_store %arg11[%c0_95, %c0_96, %c0_97], %416 {strides = array<i32>} : memref<2x2x32xf32, #tpu.memory_space<vmem>>, vector<2x2x32xf32>,
    %418 = vector.shape_cast %373 : vector<2x32xf32> to vector<2x1x32xf32>
    %419 = vector.shape_cast %396 : vector<2x32xf32> to vector<2x1x32xf32>
    %420 = tpu.concatenate %418, %419 in 1 : vector<2x1x32xf32>, vector<2x1x32xf32> -> vector<2x2x32xf32>
    %c0_98 = arith.constant 0 : index
    %c0_99 = arith.constant 0 : index
    %c0_100 = arith.constant 0 : index
    %421 = vector.load %arg12[%c0_98, %c0_99, %c0_100] : memref<2x2x32xf32, #tpu.memory_space<vmem>>, vector<2x2x32xf32>
    tpu.vector_store %arg12[%c0_98, %c0_99, %c0_100], %420 {strides = array<i32>} : memref<2x2x32xf32, #tpu.memory_space<vmem>>, vector<2x2x32xf32>,
    return
  }
  func.func @transform_0(%arg0: i32) -> (i32, i32, i32) {
    %c0_i32 = arith.constant 0 : i32
    %c0_i32_0 = arith.constant 0 : i32
    %c0_i32_1 = arith.constant 0 : i32
    return %arg0, %c0_i32, %c0_i32_0 : i32, i32, i32
  }
  func.func @transform_1(%arg0: i32) -> (i32, i32) {
    %c0_i32 = arith.constant 0 : i32
    %c0_i32_0 = arith.constant 0 : i32
    %c0_i32_1 = arith.constant 0 : i32
    return %c0_i32, %c0_i32_0 : i32, i32
  }
  func.func @transform_2(%arg0: i32) -> (i32, i32) {
    %c0_i32 = arith.constant 0 : i32
    %c0_i32_0 = arith.constant 0 : i32
    %c0_i32_1 = arith.constant 0 : i32
    return %c0_i32, %c0_i32_0 : i32, i32
  }
  func.func @transform_3(%arg0: i32) -> (i32, i32) {
    %c0_i32 = arith.constant 0 : i32
    %c0_i32_0 = arith.constant 0 : i32
    %c0_i32_1 = arith.constant 0 : i32
    return %c0_i32, %c0_i32_0 : i32, i32
  }
  func.func @transform_4(%arg0: i32) -> (i32, i32) {
    %c0_i32 = arith.constant 0 : i32
    %c0_i32_0 = arith.constant 0 : i32
    %c0_i32_1 = arith.constant 0 : i32
    return %c0_i32, %c0_i32_0 : i32, i32
  }
  func.func @transform_5(%arg0: i32) -> (i32, i32, i32) {
    %c0_i32 = arith.constant 0 : i32
    %c0_i32_0 = arith.constant 0 : i32
    %c0_i32_1 = arith.constant 0 : i32
    return %arg0, %c0_i32, %c0_i32_0 : i32, i32, i32
  }
  func.func @transform_6(%arg0: i32) -> (i32, i32, i32) {
    %c0_i32 = arith.constant 0 : i32
    %c0_i32_0 = arith.constant 0 : i32
    %c0_i32_1 = arith.constant 0 : i32
    return %arg0, %c0_i32, %c0_i32_0 : i32, i32, i32
  }
  func.func @transform_7(%arg0: i32) -> (i32, i32) {
    %c0_i32 = arith.constant 0 : i32
    %c0_i32_0 = arith.constant 0 : i32
    %c0_i32_1 = arith.constant 0 : i32
    return %c0_i32, %c0_i32_0 : i32, i32
  }
  func.func @transform_8(%arg0: i32) -> (i32, i32) {
    %c0_i32 = arith.constant 0 : i32
    %c0_i32_0 = arith.constant 0 : i32
    %c0_i32_1 = arith.constant 0 : i32
    return %c0_i32, %c0_i32_0 : i32, i32
  }
  func.func @transform_9(%arg0: i32) -> (i32, i32, i32) {
    %c0_i32 = arith.constant 0 : i32
    %c0_i32_0 = arith.constant 0 : i32
    %c0_i32_1 = arith.constant 0 : i32
    return %arg0, %c0_i32, %c0_i32_0 : i32, i32, i32
  }
  func.func @transform_10(%arg0: i32) -> (i32, i32, i32) {
    %c0_i32 = arith.constant 0 : i32
    %c0_i32_0 = arith.constant 0 : i32
    %c0_i32_1 = arith.constant 0 : i32
    return %arg0, %c0_i32, %c0_i32_0 : i32, i32, i32
  }
  func.func @transform_11(%arg0: i32) -> (i32, i32, i32) {
    %c0_i32 = arith.constant 0 : i32
    %c0_i32_0 = arith.constant 0 : i32
    %c0_i32_1 = arith.constant 0 : i32
    return %arg0, %c0_i32, %c0_i32_0 : i32, i32, i32
  }
}

</mosaic_0001>

<bundles_post_ra>
// kernel: rnn_forward.1
= control target key start
LH: loop header
LB: loop body
LE: loop exit
PB: predicated region body
PF: predicated region fallthrough
CT: control target
= control target key end

     0   :  { %vm67_vm0 = vcmask 1041409   ;;  %vm69_vm1 = vcmask 261120   ;;  %v53_v29 = vlaneseq  ;;  %s1959_s15 = smov 64   ;;  %s1960_s18 = smov 32   ;;  %s2590_s1 = inlined_call_operand.vmem [shape: f32[32,128], index: 1, kind: input, shape index: {}]   ;;  %s2591_s5 = inlined_call_operand.vmem [shape: f32[2,2,32], index: 5, kind: input, shape index: {}]   ;;  %s2592_s0 = inlined_call_operand.vmem [shape: f32[2,8,128], index: 0, kind: input, shape index: {}]   ;;  %s2593_s6 = inlined_call_operand.vmem [shape: f32[2,2,32], index: 6, kind: input, shape index: {}]   ;;  %s2594_s2 = inlined_call_operand.vmem [shape: f32[32,128], index: 2, kind: input, shape index: {}]   ;;  %s2595_s3 = inlined_call_operand.vmem [shape: f32[32,128], index: 3, kind: input, shape index: {}]   ;;  %s2596_s4 = inlined_call_operand.vmem [shape: f32[1,128], index: 4, kind: input, shape index: {}]   ;;  %s2597_s7 = inlined_call_operand.vmem [shape: f32[32,32], index: 7, kind: input, shape index: {}]   ;;  %s2598_s8 = inlined_call_operand.vmem [shape: f32[1,32], index: 8, kind: input, shape index: {}]   ;;  %s2599_s10 = inlined_call_operand.vmem [shape: f32[2,2,32], index: 10, kind: output, shape index: {1}]   ;;  %s2600_s11 = inlined_call_operand.vmem [shape: f32[2,2,32], index: 11, kind: output, shape index: {2}]   ;;  %s2601_s9 = inlined_call_operand.vmem [shape: f32[2,8,32], index: 9, kind: output, shape index: {0}]  }
   0x1   :  { %v2025_v0 = vld [vmem:[%s2590_s1 + $0x18] sm:$0xff]  ;;  %v2030_v1 = vld [vmem:[%s2590_s1 + $0x10] sm:$0xff]  ;;  %v2036_v2 = vld [vmem:[%s2591_s5 + $0x2] sm:$0x3] }
   0x2   :  { %84 = vmatpush.msra.mxu1 %v2025_v0  ;;  %284 = vmatpush.msra.mxu3 %v2025_v0  ;;  %v2042_v3 = vld [vmem:[%s2590_s1 + $0x8] sm:$0xff]  ;;  %v2047_v4 = vld [vmem:[%s2591_s5] sm:$0x3]  ;;  %v66_v5 = vrot.slane %v2036_v2, 7  ;;  %v54_v37 = vand.u32 127, %v53_v29  ;;  %v2107_v63 = vld [vmem:[%s2594_s2 + $0x18] sm:$0xff] }
   0x3   :  { %v2055_v6 = vld [vmem:[%s2590_s1] sm:$0xff]  ;;  %v2072_v9 = vld [vmem:[%s2592_s0 + $0x8] sm:$0xff]  ;;  %216 = vmatpush.msra.mxu2 %v2107_v63  ;;  %v50_v46 = vld [vmem:[%s2597_s7 + $0x10] sm:$0xff] }
   0x4   :  { %85 = vmatpush.msra.mxu1 %v2030_v1  ;;  %285 = vmatpush.msra.mxu3 %v2030_v1  ;;  %v68_v7 = vsel %vm67_vm0, %v66_v5, %v2047_v4  ;;  %v2067_v8 = vld [vmem:[%s2592_s0] sm:$0xff]  ;;  %vm55_vm10 = vcmp.ge.s32.totalorder %v54_v37, 64  ;;  %vm56_vm11 = vcmp.lt.s32.totalorder %v54_v37, 96  ;;  %v2112_v5 = vld [vmem:[%s2594_s2 + $0x10] sm:$0xff] }
   0x5   :  { %vm2076_vm12 = vmand %vm55_vm10, %vm56_vm11  ;;  %v2085_v51 = vld [vmem:[%s2593_s6 + $0x2] sm:$0x3]  ;;  %v2094_v54 = vld [vmem:[%s2593_s6] sm:$0x3]  ;;  %217 = vmatpush.msra.mxu2 %v2112_v5 }
   0x6   :  { %86 = vmatpush.msra.mxu1 %v2042_v3  ;;  %286 = vmatpush.msra.mxu3 %v2042_v3  ;;  %v177_v53 = vrot.slane %v2085_v51, 7 }
   0x8   :  { %87 = vmatpush.msra.mxu1 %v2055_v6  ;;  %287 = vmatpush.msra.mxu3 %v2055_v6  ;;  %v178_v55 = vsel %vm67_vm0, %v177_v53, %v2094_v54 }
   0x9   :  { %1737 = vmatmul.msk.f32.vlgmr.msra.gmra.mxu1 %vm69_vm1, %v68_v7  ;;  %v2118_v7 = vld [vmem:[%s2595_s3 + $0x18] sm:$0xff] }
   0xa   :  { %108 = vmatpush.msrb.mxu1 %v2118_v7  ;;  %309 = vmatpush.msra.mxu0 %v2118_v7 }
   0xb   :  { %495 = vmatpush.msrb.mxu3 %v2118_v7 }
  0x86   :  { %v89_v10 = vpop.f32.mrf.mxu1 }
  0x87   :  { %v117_v11 = vrot.slane %v89_v10, 1  ;;  %v120_v12 = vadd.f32 %v89_v10, %v2067_v8  ;;  %v2123_v10 = vld [vmem:[%s2594_s2 + $0x8] sm:$0xff] }
  0x88   :  { %218 = vmatpush.msra.mxu2 %v2123_v10 }
  0x89   :  { %v121_v13 = vadd.f32 %v117_v11, %v2072_v9  ;;  %v1739_v14 = vmul.f32 -1.442695, %v120_v12  ;;  %v2132_v11 = vld [vmem:[%s2594_s2] sm:$0xff] }
  0x8a   :  { %219 = vmatpush.msra.mxu2 %v2132_v11 }
  0x8b   :  { %1816 = vpow2.f32 %v1739_v14  ;;  %v1740_v15 = vmul.f32 -1.442695, %v121_v13  ;;  %v92_v14 = vrot.slane %v2047_v4, 1 }
  0x8c   :  { %470 = vmatpush.msrb.mxu2 %v2025_v0 }
  0x8d   :  { %1818 = vpow2.f32 %v1740_v15  ;;  %v2145_v15 = vld [vmem:[%s2595_s3 + $0x10] sm:$0xff]  ;;  %v93_v4 = vsel %vm67_vm0, %v2036_v2, %v92_v14 }
  0x8e   :  { %471 = vmatpush.msrb.mxu2 %v2030_v1  ;;  %109 = vmatpush.msrb.mxu1 %v2145_v15 }
  0x8f   :  { %310 = vmatpush.msra.mxu0 %v2145_v15  ;;  %496 = vmatpush.msrb.mxu3 %v2145_v15 }
  0x90   :  { %472 = vmatpush.msrb.mxu2 %v2042_v3 }
  0x91   :  { %v1817_v16 = vpop.eup %1816 }
  0x92   :  { %v128_v17 = vadd.f32 1.0, %v1817_v16  ;;  %473 = vmatpush.msrb.mxu2 %v2055_v6  ;;  %v2150_v16 = vld [vmem:[%s2595_s3 + $0x8] sm:$0xff] }
  0x93   :  { %v1819_v18 = vpop.eup %1818  ;;  %110 = vmatpush.msrb.mxu1 %v2150_v16  ;;  %311 = vmatpush.msra.mxu0 %v2150_v16 }
  0x94   :  { %v129_v19 = vadd.f32 1.0, %v1819_v18  ;;  %1820 = vrcp.f32 %v128_v17  ;;  %v141_v25 = vand.u32 2147483648, %v128_v17  ;;  %v139_v28 = vand.u32 2147483647, %v128_v17  ;;  %497 = vmatpush.msrb.mxu3 %v2150_v16 }
  0x95   :  { %vm135_vm3 = vweird.f32 %v128_v17 }
  0x96   :  { %1822 = vrcp.f32 %v129_v19  ;;  %v156_v30 = vand.u32 2147483648, %v129_v19  ;;  %v154_v33 = vand.u32 2147483647, %v129_v19  ;;  %v142_v34 = vor.u32 1.1754944e-38, %v141_v25 }
  0x97   :  { %vm140_vm6 = vcmp.eq.f32.partialorder %v139_v28, 8.507059e+37  ;;  %vm150_vm7 = vweird.f32 %v129_v19 }
  0x98   :  { %v157_v39 = vor.u32 1.1754944e-38, %v156_v30  ;;  %vm155_vm9 = vcmp.eq.f32.partialorder %v154_v33, 8.507059e+37 }
  0x9a   :  { %v1821_v20 = vpop.eup %1820 }
  0x9b   :  { %v131_v21 = vmul.f32 %v1821_v20, %v128_v17  ;;  %vm136_vm2 = vweird.f32 %v1821_v20  ;;  %v2157_v17 = vld [vmem:[%s2595_s3] sm:$0xff] }
  0x9c   :  { %v1823_v22 = vpop.eup %1822  ;;  %vm137_vm5 = vmor %vm135_vm3, %vm136_vm2  ;;  %111 = vmatpush.msrb.mxu1 %v2157_v17  ;;  %312 = vmatpush.msra.mxu0 %v2157_v17 }
  0x9d   :  { %v132_v23 = vsub.f32 1.0, %v131_v21  ;;  %v146_v24 = vmul.f32 %v1823_v22, %v129_v19  ;;  %vm151_vm4 = vweird.f32 %v1823_v22  ;;  %1738 = vmatmul.msk.f32.vlgmr.msrb.gmra.mxu1 %vm69_vm1, %v93_v4  ;;  %498 = vmatpush.msrb.mxu3 %v2157_v17  ;;  %v2194_v19 = vld [vmem:[%s2596_s4] ss:$0 sm:$0xff] }
  0x9e   :  { %vm152_vm8 = vmor %vm150_vm7, %vm151_vm4  ;;  %599 = vmatpush.msrb.mxu0 %v2107_v63  ;;  %410 = vmatpush.msra.mxu1 %v2107_v63 }
  0x9f   :  { %v147_v26 = vsub.f32 1.0, %v146_v24  ;;  %v133_v27 = vmul.f32 %v1821_v20, %v132_v23 }
  0xa0   :  { %600 = vmatpush.msrb.mxu0 %v2112_v5  ;;  %411 = vmatpush.msra.mxu1 %v2112_v5 }
  0xa1   :  { %v134_v31 = vadd.f32 %v1821_v20, %v133_v27  ;;  %v148_v32 = vmul.f32 %v1823_v22, %v147_v26 }
  0xa2   :  { %601 = vmatpush.msrb.mxu0 %v2123_v10  ;;  %412 = vmatpush.msra.mxu1 %v2123_v10 }
  0xa3   :  { %v138_v35 = vsel %vm137_vm5, %v1821_v20, %v134_v31  ;;  %v149_v36 = vadd.f32 %v1823_v22, %v148_v32 }
  0xa4   :  { %v143_v38 = vsel %vm140_vm6, %v142_v34, %v138_v35  ;;  %602 = vmatpush.msrb.mxu0 %v2132_v11  ;;  %413 = vmatpush.msra.mxu1 %v2132_v11 }
  0xa5   :  { %v153_v40 = vsel %vm152_vm8, %v1823_v22, %v149_v36  ;;  %v160_v42 = vmul.f32 2.0, %v143_v38 }
  0xa6   :  { %v158_v41 = vsel %vm155_vm9, %v157_v39, %v153_v40  ;;  %659 = vmatpush.msrb.mxu1 %v2025_v0 }
  0xa7   :  { %v161_v43 = vmul.f32 2.0, %v158_v41  ;;  %v171_v45 = vrot.slane %v158_v41, 7  ;;  %v1741_v47 = vadd.f32 -1.0, %v160_v42 }
  0xa8   :  { %660 = vmatpush.msrb.mxu1 %v2030_v1 }
  0xa9   :  { %v1742_v44 = vadd.f32 -1.0, %v161_v43  ;;  %v172_v50 = vsel %vm67_vm0, %v171_v45, %v143_v38 }
  0xaa   :  { %661 = vmatpush.msrb.mxu1 %v2042_v3 }
  0xab   :  { %v166_v48 = vrot.slane %v1742_v44, 7 }
  0xac   :  { %662 = vmatpush.msrb.mxu1 %v2055_v6 }
  0xad   :  { %v167_v49 = vsel %vm67_vm0, %v166_v48, %v1741_v47 }
  0xae   :  { %v174_v52 = vsel %vm2076_vm12, %v167_v49, %v172_v50 }
  0xaf   :  { %184 = vrot.lane.b32.xlu0 %v174_v52, %s1959_s15 }
  0xb7   :  { %179 = vrot.lane.b32.xlu0 %v178_v55, %s1960_s18 }
 0x11a   :  { %v113_v18 = vpop.f32.mrf.mxu1 }
 0x121   :  { %v185_v56 = vpop.permute.xlu0 %184 }
 0x122   :  { %v187_v57 = vmul.f32 %v185_v56, %v174_v52 }
 0x124   :  { %189 = vrot.lane.b32.xlu1 %v187_v57, %s1960_s18 }
 0x129   :  { %v180_v58 = vpop.permute.xlu0 %179 }
 0x12a   :  { %v182_v59 = vmul.f32 %v180_v58, %v174_v52 }
 0x196   :  { %v190_v60 = vpop.permute.xlu1 %189 }
 0x197   :  { %v2100_v61 = vadd.f32 %v190_v60, %v182_v59 }
 0x199   :  { %1824 = vtanh.f32 %v2100_v61 }
 0x19f   :  { %v1825_v62 = vpop.eup %1824 }
 0x1a0   :  { %195 = vrot.lane.b32.xlu1 %v1825_v62, %s1959_s15 }
 0x212   :  { %v196_v12 = vpop.permute.xlu1 %195 }
 0x213   :  { %v198_v13 = vmul.f32 %v196_v12, %v174_v52 }
 0x215   :  { %200 = vrot.lane.b32.xlu2 %v198_v13, %s1960_s18 }
 0x26f   :  { %v201_v2 = vpop.permute.xlu2 %200 }
 0x270   :  { %1743 = vmatmul.msk.f32.vlgmr.msra.gmra.mxu2 %vm69_vm1, %v201_v2  ;;  %1746 = vmatmul.msk.f32.vlgmr.msra.gmra.mxu3 %vm69_vm1, %v201_v2 }
 0x271   :  { %684 = vmatpush.msra.mxu2 %v2118_v7  ;;  %788 = vmatpush.msra.mxu3 %v2107_v63 }
 0x273   :  { %685 = vmatpush.msra.mxu2 %v2145_v15  ;;  %789 = vmatpush.msra.mxu3 %v2112_v5 }
 0x275   :  { %686 = vmatpush.msra.mxu2 %v2150_v16  ;;  %790 = vmatpush.msra.mxu3 %v2123_v10 }
 0x277   :  { %687 = vmatpush.msra.mxu2 %v2157_v17  ;;  %791 = vmatpush.msra.mxu3 %v2132_v11 }
 0x2f3   :  { %v221_v20 = vpop.f32.mrf.mxu2  ;;  %v289_v21 = vpop.f32.mrf.mxu3 }
 0x2f4   :  { %v222_v22 = vadd.f32 %v221_v20, %v113_v18  ;;  %v318_v23 = vrot.slane %v289_v21, 7  ;;  %v322_v24 = vadd.f32 %v289_v21, %v2072_v9 }
 0x2f6   :  { %v227_v25 = vadd.f32 %v2194_v19, %v222_v22  ;;  %v321_v26 = vadd.f32 %v318_v23, %v2067_v8  ;;  %v1749_v27 = vmul.f32 -1.442695, %v322_v24 }
 0x2f8   :  { %v1744_v28 = vmul.f32 -1.442695, %v227_v25  ;;  %v1748_v29 = vmul.f32 -1.442695, %v321_v26  ;;  %1826 = vpow2.f32 %v1749_v27 }
 0x2fa   :  { %1828 = vpow2.f32 %v1744_v28 }
 0x2fb   :  { %1830 = vpow2.f32 %v1748_v29 }
 0x2fe   :  { %v1827_v30 = vpop.eup %1826 }
 0x2ff   :  { %v330_v31 = vadd.f32 1.0, %v1827_v30 }
 0x300   :  { %v1829_v32 = vpop.eup %1828 }
 0x301   :  { %v1831_v33 = vpop.eup %1830  ;;  %v231_v34 = vadd.f32 1.0, %v1829_v32  ;;  %1832 = vrcp.f32 %v330_v31  ;;  %vm351_vm13 = vweird.f32 %v330_v31  ;;  %v357_v45 = vand.u32 2147483648, %v330_v31 }
 0x302   :  { %v329_v35 = vadd.f32 1.0, %v1831_v33  ;;  %v355_v50 = vand.u32 2147483647, %v330_v31  ;;  %v250_v33 = vrot.slane %v2094_v54, 1 }
 0x303   :  { %1834 = vrcp.f32 %v231_v34  ;;  %v241_v48 = vand.u32 2147483647, %v231_v34  ;;  %v243_v49 = vand.u32 2147483648, %v231_v34  ;;  %vm237_vm4 = vweird.f32 %v231_v34 }
 0x304   :  { %1836 = vrcp.f32 %v329_v35  ;;  %v342_v53 = vand.u32 2147483648, %v329_v35  ;;  %v340_v57 = vand.u32 2147483647, %v329_v35  ;;  %v358_v60 = vor.u32 1.1754944e-38, %v357_v45 }
 0x305   :  { %v244_v62 = vor.u32 1.1754944e-38, %v243_v49  ;;  %vm336_vm6 = vweird.f32 %v329_v35  ;;  %vm356_vm7 = vcmp.eq.f32.partialorder %v355_v50, 8.507059e+37  ;;  %vm242_vm8 = vcmp.eq.f32.partialorder %v241_v48, 8.507059e+37 }
 0x306   :  { %v343_v14 = vor.u32 1.1754944e-38, %v342_v53  ;;  %vm341_vm10 = vcmp.eq.f32.partialorder %v340_v57, 8.507059e+37 }
 0x307   :  { %v1833_v36 = vpop.eup %1832 }
 0x308   :  { %v347_v37 = vmul.f32 %v1833_v36, %v330_v31  ;;  %vm352_vm14 = vweird.f32 %v1833_v36 }
 0x309   :  { %v1835_v38 = vpop.eup %1834  ;;  %vm353_vm3 = vmor %vm351_vm13, %vm352_vm14 }
 0x30a   :  { %v1837_v39 = vpop.eup %1836  ;;  %v348_v40 = vsub.f32 1.0, %v347_v37  ;;  %v233_v41 = vmul.f32 %v1835_v38, %v231_v34  ;;  %vm238_vm15 = vweird.f32 %v1835_v38  ;;  %v251_v34 = vsel %vm67_vm0, %v2085_v51, %v250_v33 }
 0x30b   :  { %v332_v42 = vmul.f32 %v1837_v39, %v329_v35  ;;  %vm337_vm2 = vweird.f32 %v1837_v39  ;;  %vm239_vm5 = vmor %vm237_vm4, %vm238_vm15 }
 0x30c   :  { %v234_v43 = vsub.f32 1.0, %v233_v41  ;;  %v349_v44 = vmul.f32 %v1833_v36, %v348_v40  ;;  %vm338_vm9 = vmor %vm336_vm6, %vm337_vm2 }
 0x30d   :  { %v333_v47 = vsub.f32 1.0, %v332_v42 }
 0x30e   :  { %v235_v52 = vmul.f32 %v1835_v38, %v234_v43  ;;  %v350_v55 = vadd.f32 %v1833_v36, %v349_v44 }
 0x30f   :  { %v334_v56 = vmul.f32 %v1837_v39, %v333_v47 }
 0x310   :  { %v236_v58 = vadd.f32 %v1835_v38, %v235_v52  ;;  %v354_v59 = vsel %vm353_vm3, %v1833_v36, %v350_v55 }
 0x311   :  { %v335_v12 = vadd.f32 %v1837_v39, %v334_v56  ;;  %v359_v4 = vsel %vm356_vm7, %v358_v60, %v354_v59 }
 0x312   :  { %v240_v13 = vsel %vm239_vm5, %v1835_v38, %v236_v58  ;;  %v362_v23 = vmul.f32 2.0, %v359_v4 }
 0x313   :  { %v245_v2 = vsel %vm242_vm8, %v244_v62, %v240_v13  ;;  %v339_v18 = vsel %vm338_vm9, %v1837_v39, %v335_v12 }
 0x314   :  { %v247_v20 = vmul.f32 2.0, %v245_v2  ;;  %v344_v21 = vsel %vm341_vm10, %v343_v14, %v339_v18  ;;  %v1751_v28 = vadd.f32 -1.0, %v362_v23 }
 0x315   :  { %v361_v22 = vmul.f32 2.0, %v344_v21  ;;  %v372_v26 = vrot.slane %v344_v21, 1 }
 0x316   :  { %v1745_v24 = vadd.f32 -1.0, %v247_v20 }
 0x317   :  { %v1750_v25 = vadd.f32 -1.0, %v361_v22  ;;  %v373_v31 = vsel %vm67_vm0, %v359_v4, %v372_v26 }
 0x318   :  { %v249_v27 = vsel %vm2076_vm12, %v1745_v24, %v245_v2 }
 0x319   :  { %257 = vrot.lane.b32.xlu0 %v249_v27, %s1959_s15  ;;  %v367_v29 = vrot.slane %v1750_v25, 1 }
 0x31b   :  { %v368_v30 = vsel %vm67_vm0, %v1751_v28, %v367_v29 }
 0x31c   :  { %v375_v32 = vsel %vm2076_vm12, %v368_v30, %v373_v31 }
 0x31d   :  { %378 = vrot.lane.b32.xlu2 %v375_v32, %s1959_s15  ;;  %v376_v39 = vmul.f32 %v375_v32, %v2100_v61 }
 0x325   :  { %252 = vrot.lane.b32.xlu2 %v251_v34, %s1960_s18 }
 0x377   :  { %v379_v35 = vpop.permute.xlu2 %378 }
 0x378   :  { %v381_v36 = vmul.f32 %v379_v35, %v375_v32 }
 0x37a   :  { %383 = vrot.lane.b32.xlu1 %v381_v36, %s1960_s18 }
 0x37f   :  { %v253_v51 = vpop.permute.xlu2 %252 }
 0x380   :  { %v255_v42 = vmul.f32 %v253_v51, %v249_v27 }
 0x38b   :  { %v258_v37 = vpop.permute.xlu0 %257 }
 0x38c   :  { %v260_v38 = vmul.f32 %v258_v37, %v249_v27 }
 0x38e   :  { %262 = vrot.lane.b32.xlu0 %v260_v38, %s1960_s18 }
 0x3ec   :  { %v384_v40 = vpop.permute.xlu1 %383 }
 0x3ed   :  { %v2215_v41 = vadd.f32 %v384_v40, %v376_v39 }
 0x3ef   :  { %1838 = vtanh.f32 %v2215_v41 }
 0x3f5   :  { %v1839_v54 = vpop.eup %1838 }
 0x3f6   :  { %389 = vrot.lane.b32.xlu1 %v1839_v54, %s1959_s15 }
 0x400   :  { %v263_v43 = vpop.permute.xlu0 %262 }
 0x401   :  { %v2219_v44 = vadd.f32 %v263_v43, %v255_v42 }
 0x403   :  { %1840 = vtanh.f32 %v2219_v44 }
 0x409   :  { %v1841_v45 = vpop.eup %1840 }
 0x40a   :  { %268 = vrot.lane.b32.xlu2 %v1841_v45, %s1959_s15 }
 0x464   :  { %v269_v47 = vpop.permute.xlu2 %268 }
 0x465   :  { %v2223_v61 = vmul.f32 %v269_v47, %v249_v27 }
 0x467   :  { %293 = vrot.lane.b32.xlu1 %v2223_v61, %s1960_s18 }
 0x468   :  { %v390_v48 = vpop.permute.xlu1 %389 }
 0x469   :  { %v392_v49 = vmul.f32 %v390_v48, %v375_v32 }
 0x46b   :  { %394 = vrot.lane.b32.xlu0 %v392_v49, %s1960_s18 }
 0x4d9   :  { %v294_v50 = vpop.permute.xlu1 %293 }
 0x4da   :  { %1747 = vmatmul.msk.f32.vlgmr.msra.gmra.mxu0 %vm69_vm1, %v294_v50 }
 0x4db   :  { %848 = vmatpush.msra.mxu0 %v2025_v0 }
 0x4dd   :  { %v395_v52 = vpop.permute.xlu0 %394  ;;  %849 = vmatpush.msra.mxu0 %v2030_v1 }
 0x4de   :  { %1752 = vmatmul.msk.f32.vlgmr.msra.gmra.mxu1 %vm69_vm1, %v395_v52  ;;  %1755 = vmatmul.msk.f32.vlgmr.msrb.gmra.mxu2 %vm69_vm1, %v395_v52 }
 0x4df   :  { %850 = vmatpush.msra.mxu0 %v2042_v3  ;;  %977 = vmatpush.msrb.mxu2 %v2107_v63 }
 0x4e0   :  { %873 = vmatpush.msra.mxu1 %v2118_v7 }
 0x4e1   :  { %851 = vmatpush.msra.mxu0 %v2055_v6  ;;  %978 = vmatpush.msrb.mxu2 %v2112_v5 }
 0x4e2   :  { %874 = vmatpush.msra.mxu1 %v2145_v15 }
 0x4e3   :  { %979 = vmatpush.msrb.mxu2 %v2123_v10 }
 0x4e4   :  { %875 = vmatpush.msra.mxu1 %v2150_v16 }
 0x4e5   :  { %980 = vmatpush.msrb.mxu2 %v2132_v11 }
 0x4e6   :  { %876 = vmatpush.msra.mxu1 %v2157_v17 }
 0x557   :  { %v314_v53 = vpop.f32.mrf.mxu0 }
 0x55b   :  { %v415_v55 = vpop.f32.mrf.mxu1 }
 0x55c   :  { %v416_v56 = vadd.f32 %v415_v55, %v314_v53 }
 0x55e   :  { %v418_v57 = vadd.f32 %v2194_v19, %v416_v56 }
 0x560   :  { %v1753_v58 = vmul.f32 -1.442695, %v418_v57 }
 0x561   :  { %v475_v59 = vpop.f32.mrf.mxu2 }
 0x562   :  { %1842 = vpow2.f32 %v1753_v58  ;;  %v504_v60 = vrot.slane %v475_v59, 6  ;;  %v505_v62 = vrot.slane %v475_v59, 7 }
 0x564   :  { %v508_v12 = vadd.f32 %v504_v60, %v2067_v8  ;;  %v509_v13 = vadd.f32 %v505_v62, %v2072_v9 }
 0x566   :  { %v1757_v14 = vmul.f32 -1.442695, %v508_v12  ;;  %v1758_v4 = vmul.f32 -1.442695, %v509_v13 }
 0x568   :  { %v1843_v2 = vpop.eup %1842  ;;  %1844 = vpow2.f32 %v1757_v14 }
 0x569   :  { %v422_v18 = vadd.f32 1.0, %v1843_v2  ;;  %1846 = vpow2.f32 %v1758_v4 }
 0x56b   :  { %1848 = vrcp.f32 %v422_v18  ;;  %v434_v27 = vand.u32 2147483648, %v422_v18  ;;  %v432_v29 = vand.u32 2147483647, %v422_v18  ;;  %vm428_vm13 = vweird.f32 %v422_v18 }
 0x56d   :  { %v435_v35 = vor.u32 1.1754944e-38, %v434_v27  ;;  %vm433_vm15 = vcmp.eq.f32.partialorder %v432_v29, 8.507059e+37 }
 0x56e   :  { %v1845_v20 = vpop.eup %1844 }
 0x56f   :  { %v1847_v21 = vpop.eup %1846  ;;  %v516_v22 = vadd.f32 1.0, %v1845_v20 }
 0x570   :  { %v517_v23 = vadd.f32 1.0, %v1847_v21 }
 0x571   :  { %v1849_v24 = vpop.eup %1848  ;;  %1850 = vrcp.f32 %v516_v22  ;;  %v527_v40 = vand.u32 2147483647, %v516_v22  ;;  %v529_v54 = vand.u32 2147483648, %v516_v22  ;;  %vm523_vm4 = vweird.f32 %v516_v22 }
 0x572   :  { %1852 = vrcp.f32 %v517_v23  ;;  %v424_v25 = vmul.f32 %v1849_v24, %v422_v18  ;;  %vm429_vm11 = vweird.f32 %v1849_v24  ;;  %v544_v43 = vand.u32 2147483648, %v517_v23 }
 0x573   :  { %vm430_vm14 = vmor %vm428_vm13, %vm429_vm11  ;;  %v542_v47 = vand.u32 2147483647, %v517_v23  ;;  %v530_v50 = vor.u32 1.1754944e-38, %v529_v54  ;;  %vm538_vm6 = vweird.f32 %v517_v23  ;;  %vm528_vm7 = vcmp.eq.f32.partialorder %v527_v40, 8.507059e+37 }
 0x574   :  { %v425_v26 = vsub.f32 1.0, %v424_v25  ;;  %v545_v56 = vor.u32 1.1754944e-38, %v544_v43 }
 0x575   :  { %vm543_vm9 = vcmp.eq.f32.partialorder %v542_v47, 8.507059e+37 }
 0x576   :  { %v426_v28 = vmul.f32 %v1849_v24, %v425_v26 }
 0x577   :  { %v1851_v30 = vpop.eup %1850 }
 0x578   :  { %v1853_v31 = vpop.eup %1852  ;;  %v519_v32 = vmul.f32 %v1851_v30, %v516_v22  ;;  %v427_v33 = vadd.f32 %v1849_v24, %v426_v28  ;;  %vm524_vm2 = vweird.f32 %v1851_v30 }
 0x579   :  { %v534_v34 = vmul.f32 %v1853_v31, %v517_v23  ;;  %vm539_vm3 = vweird.f32 %v1853_v31  ;;  %vm525_vm5 = vmor %vm523_vm4, %vm524_vm2 }
 0x57a   :  { %v520_v36 = vsub.f32 1.0, %v519_v32  ;;  %v431_v37 = vsel %vm430_vm14, %v1849_v24, %v427_v33  ;;  %vm540_vm8 = vmor %vm538_vm6, %vm539_vm3 }
 0x57b   :  { %v535_v38 = vsub.f32 1.0, %v534_v34  ;;  %v436_v39 = vsel %vm433_vm15, %v435_v35, %v431_v37 }
 0x57c   :  { %v438_v51 = vmul.f32 2.0, %v436_v39  ;;  %v521_v42 = vmul.f32 %v1851_v30, %v520_v36 }
 0x57d   :  { %v536_v45 = vmul.f32 %v1853_v31, %v535_v38 }
 0x57e   :  { %v1754_v48 = vadd.f32 -1.0, %v438_v51  ;;  %v522_v49 = vadd.f32 %v1851_v30, %v521_v42 }
 0x57f   :  { %v537_v52 = vadd.f32 %v1853_v31, %v536_v45 }
 0x580   :  { %v440_v53 = vsel %vm2076_vm12, %v1754_v48, %v436_v39  ;;  %v526_v55 = vsel %vm525_vm5, %v1851_v30, %v522_v49 }
 0x581   :  { %443 = vrot.lane.b32.xlu0 %v440_v53, %s1959_s15  ;;  %v531_v57 = vsel %vm528_vm7, %v530_v50, %v526_v55  ;;  %v541_v58 = vsel %vm540_vm8, %v1853_v31, %v537_v52  ;;  %v441_v27 = vmul.f32 %v440_v53, %v2219_v44 }
 0x582   :  { %v546_v59 = vsel %vm543_vm9, %v545_v56, %v541_v58  ;;  %v548_v60 = vmul.f32 2.0, %v531_v57  ;;  %v560_v14 = vrot.slane %v531_v57, 2  ;;  %vm1630_vm9 = vcmask 1040384  }
 0x583   :  { %v549_v62 = vmul.f32 2.0, %v546_v59  ;;  %v561_v4 = vrot.slane %v546_v59, 1 }
 0x584   :  { %v1759_v12 = vadd.f32 -1.0, %v548_v60 }
 0x585   :  { %v1760_v13 = vadd.f32 -1.0, %v549_v62  ;;  %v562_v21 = vsel %vm67_vm0, %v561_v4, %v560_v14 }
 0x586   :  { %v554_v2 = vrot.slane %v1759_v12, 2 }
 0x587   :  { %v555_v18 = vrot.slane %v1760_v13, 1 }
 0x589   :  { %v556_v20 = vsel %vm67_vm0, %v555_v18, %v554_v2 }
 0x58a   :  { %v564_v22 = vsel %vm2076_vm12, %v556_v20, %v562_v21 }
 0x58b   :  { %567 = vrot.lane.b32.xlu2 %v564_v22, %s1959_s15  ;;  %v565_v31 = vmul.f32 %v564_v22, %v2215_v41 }
 0x5e5   :  { %v568_v23 = vpop.permute.xlu2 %567 }
 0x5e6   :  { %v570_v24 = vmul.f32 %v568_v23, %v564_v22 }
 0x5e8   :  { %572 = vrot.lane.b32.xlu1 %v570_v24, %s1960_s18 }
 0x5f3   :  { %v444_v25 = vpop.permute.xlu0 %443 }
 0x5f4   :  { %v446_v26 = vmul.f32 %v444_v25, %v440_v53 }
 0x5f6   :  { %448 = vrot.lane.b32.xlu2 %v446_v26, %s1960_s18 }
 0x650   :  { %v449_v28 = vpop.permute.xlu2 %448 }
 0x651   :  { %v2257_v29 = vadd.f32 %v449_v28, %v441_v27 }
 0x653   :  { %1854 = vtanh.f32 %v2257_v29 }
 0x659   :  { %v1855_v30 = vpop.eup %1854 }
 0x65a   :  { %v573_v32 = vpop.permute.xlu1 %572  ;;  %454 = vrot.lane.b32.xlu1 %v1855_v30, %s1959_s15 }
 0x65b   :  { %v2262_v33 = vadd.f32 %v573_v32, %v565_v31 }
 0x65d   :  { %1856 = vtanh.f32 %v2262_v33 }
 0x663   :  { %v1857_v34 = vpop.eup %1856 }
 0x664   :  { %578 = vrot.lane.b32.xlu0 %v1857_v34, %s1959_s15 }
 0x6cc   :  { %v455_v35 = vpop.permute.xlu1 %454 }
 0x6cd   :  { %v2266_v44 = vmul.f32 %v455_v35, %v440_v53 }
 0x6cf   :  { %479 = vrot.lane.b32.xlu0 %v2266_v44, %s1960_s18 }
 0x6d6   :  { %v579_v36 = vpop.permute.xlu0 %578 }
 0x6d7   :  { %v581_v37 = vmul.f32 %v579_v36, %v564_v22 }
 0x6d9   :  { %583 = vrot.lane.b32.xlu2 %v581_v37, %s1960_s18 }
 0x733   :  { %v584_v41 = vpop.permute.xlu2 %583 }
 0x734   :  { %1761 = vmatmul.msk.f32.vlgmr.msrb.gmra.mxu0 %vm69_vm1, %v584_v41  ;;  %1764 = vmatmul.msk.f32.vlgmr.msrb.gmra.mxu1 %vm69_vm1, %v584_v41 }
 0x735   :  { %1166 = vmatpush.msrb.mxu1 %v2107_v63  ;;  %1062 = vmatpush.msrb.mxu0 %v2118_v7 }
 0x737   :  { %1167 = vmatpush.msrb.mxu1 %v2112_v5  ;;  %1063 = vmatpush.msrb.mxu0 %v2145_v15 }
 0x739   :  { %1168 = vmatpush.msrb.mxu1 %v2123_v10  ;;  %1064 = vmatpush.msrb.mxu0 %v2150_v16 }
 0x73b   :  { %1169 = vmatpush.msrb.mxu1 %v2132_v11  ;;  %1065 = vmatpush.msrb.mxu0 %v2157_v17 }
 0x741   :  { %v480_v38 = vpop.permute.xlu0 %479 }
 0x742   :  { %1756 = vmatmul.msk.f32.vlgmr.msrb.gmra.mxu3 %vm69_vm1, %v480_v38 }
 0x743   :  { %1037 = vmatpush.msrb.mxu3 %v2025_v0 }
 0x745   :  { %1038 = vmatpush.msrb.mxu3 %v2030_v1 }
 0x747   :  { %1039 = vmatpush.msrb.mxu3 %v2042_v3 }
 0x749   :  { %1040 = vmatpush.msrb.mxu3 %v2055_v6 }
 0x7b1   :  { %v664_v39 = vpop.f32.mrf.mxu1  ;;  %v604_v1 = vpop.f32.mrf.mxu0 }
 0x7b2   :  { %v693_v40 = vrot.slane %v664_v39, 5  ;;  %v694_v54 = vrot.slane %v664_v39, 6 }
 0x7b4   :  { %v697_v51 = vadd.f32 %v693_v40, %v2067_v8  ;;  %v698_v42 = vadd.f32 %v694_v54, %v2072_v9 }
 0x7b6   :  { %v1766_v43 = vmul.f32 -1.442695, %v697_v51  ;;  %v1767_v45 = vmul.f32 -1.442695, %v698_v42 }
 0x7b8   :  { %1858 = vpow2.f32 %v1766_v43 }
 0x7b9   :  { %1860 = vpow2.f32 %v1767_v45 }
 0x7be   :  { %v1859_v47 = vpop.eup %1858 }
 0x7bf   :  { %v1861_v48 = vpop.eup %1860  ;;  %v705_v0 = vadd.f32 1.0, %v1859_v47 }
 0x7c0   :  { %v706_v49 = vadd.f32 1.0, %v1861_v48 }
 0x7c1   :  { %1862 = vrcp.f32 %v705_v0  ;;  %v716_v58 = vand.u32 2147483647, %v705_v0  ;;  %v718_v59 = vand.u32 2147483648, %v705_v0  ;;  %vm712_vm13 = vweird.f32 %v705_v0 }
 0x7c2   :  { %1864 = vrcp.f32 %v706_v49  ;;  %v733_v62 = vand.u32 2147483648, %v706_v49  ;;  %v731_v13 = vand.u32 2147483647, %v706_v49  ;;  %vm727_vm15 = vweird.f32 %v706_v49 }
 0x7c3   :  { %v719_v4 = vor.u32 1.1754944e-38, %v718_v59  ;;  %vm717_vm2 = vcmp.eq.f32.partialorder %v716_v58, 8.507059e+37 }
 0x7c4   :  { %v734_v20 = vor.u32 1.1754944e-38, %v733_v62  ;;  %vm732_vm4 = vcmp.eq.f32.partialorder %v731_v13, 8.507059e+37  ;;  %v1594_v62 = vrot.slane %v2266_v44, 1 }
 0x7c5   :  { %v500_v3 = vpop.f32.mrf.mxu3 }
 0x7c6   :  { %v605_v6 = vadd.f32 %v604_v1, %v500_v3 }
 0x7c7   :  { %v1863_v50 = vpop.eup %1862 }
 0x7c8   :  { %v1865_v52 = vpop.eup %1864  ;;  %v708_v53 = vmul.f32 %v1863_v50, %v705_v0  ;;  %v607_v8 = vadd.f32 %v2194_v19, %v605_v6  ;;  %vm713_vm10 = vweird.f32 %v1863_v50 }
 0x7c9   :  { %v723_v55 = vmul.f32 %v1865_v52, %v706_v49  ;;  %vm728_vm11 = vweird.f32 %v1865_v52  ;;  %vm714_vm14 = vmor %vm712_vm13, %vm713_vm10  ;;  %vm1633_vm10 = vcmask 1041408  }
 0x7ca   :  { %v709_v9 = vsub.f32 1.0, %v708_v53  ;;  %v1762_v56 = vmul.f32 -1.442695, %v607_v8  ;;  %vm729_vm3 = vmor %vm727_vm15, %vm728_vm11 }
 0x7cb   :  { %v724_v57 = vsub.f32 1.0, %v723_v55 }
 0x7cc   :  { %1866 = vpow2.f32 %v1762_v56  ;;  %v710_v60 = vmul.f32 %v1863_v50, %v709_v9 }
 0x7cd   :  { %v725_v12 = vmul.f32 %v1865_v52, %v724_v57 }
 0x7ce   :  { %v711_v14 = vadd.f32 %v1863_v50, %v710_v60 }
 0x7cf   :  { %v726_v2 = vadd.f32 %v1865_v52, %v725_v12  ;;  %v1602_v12 = vperm.slane %v2266_v44, 0 }
 0x7d0   :  { %v715_v18 = vsel %vm714_vm14, %v1863_v50, %v711_v14  ;;  %v1603_v14 = vperm.slane %v1594_v62, 0 }
 0x7d1   :  { %v720_v21 = vsel %vm717_vm2, %v719_v4, %v715_v18  ;;  %v730_v22 = vsel %vm729_vm3, %v1865_v52, %v726_v2  ;;  %v1592_v18 = vrot.slane %v2223_v61, 1 }
 0x7d2   :  { %v1867_v23 = vpop.eup %1866  ;;  %v735_v24 = vsel %vm732_vm4, %v734_v20, %v730_v22  ;;  %v737_v25 = vmul.f32 2.0, %v720_v21  ;;  %v749_v31 = vrot.slane %v720_v21, 3  ;;  %v1631_v20 = vsel %vm1630_vm9, %v2223_v61, %v1602_v12  ;;  %v2331_v61 = vld [vmem:[%s2590_s1 + $0x10] sm:$0xff] }
 0x7d3   :  { %v611_v26 = vadd.f32 1.0, %v1867_v23  ;;  %v738_v27 = vmul.f32 2.0, %v735_v24  ;;  %v750_v32 = vrot.slane %v735_v24, 2  ;;  %v1632_v23 = vsel %vm1630_vm9, %v1592_v18, %v1603_v14 }
 0x7d4   :  { %v1768_v28 = vadd.f32 -1.0, %v737_v25  ;;  %v2325_v25 = vld [vmem:[%s2590_s1 + $0x18] sm:$0xff] }
 0x7d5   :  { %1868 = vrcp.f32 %v611_v26  ;;  %v1769_v30 = vadd.f32 -1.0, %v738_v27  ;;  %v751_v37 = vsel %vm67_vm0, %v750_v32, %v749_v31  ;;  %v623_v54 = vand.u32 2147483648, %v611_v26 }
 0x7d6   :  { %v743_v34 = vrot.slane %v1768_v28, 3  ;;  %v621_v42 = vand.u32 2147483647, %v611_v26  ;;  %vm617_vm6 = vweird.f32 %v611_v26  ;;  %v2343_v28 = vld [vmem:[%s2590_s1] sm:$0xff] }
 0x7d7   :  { %v744_v35 = vrot.slane %v1769_v30, 2  ;;  %v624_v45 = vor.u32 1.1754944e-38, %v623_v54 }
 0x7d8   :  { %vm622_vm8 = vcmp.eq.f32.partialorder %v621_v42, 8.507059e+37 }
 0x7d9   :  { %v745_v36 = vsel %vm67_vm0, %v744_v35, %v743_v34 }
 0x7da   :  { %v753_v41 = vsel %vm2076_vm12, %v745_v36, %v751_v37 }
 0x7db   :  { %v1869_v38 = vpop.eup %1868  ;;  %756 = vrot.lane.b32.xlu1 %v753_v41, %s1959_s15  ;;  %v754_v9 = vmul.f32 %v753_v41, %v2262_v33 }
 0x7dc   :  { %v613_v39 = vmul.f32 %v1869_v38, %v611_v26  ;;  %vm618_vm5 = vweird.f32 %v1869_v38  ;;  %v2337_v26 = vld [vmem:[%s2590_s1 + $0x8] sm:$0xff] }
 0x7dd   :  { %vm619_vm7 = vmor %vm617_vm6, %vm618_vm5 }
 0x7de   :  { %v614_v40 = vsub.f32 1.0, %v613_v39 }
 0x7e0   :  { %v615_v51 = vmul.f32 %v1869_v38, %v614_v40 }
 0x7e2   :  { %v616_v43 = vadd.f32 %v1869_v38, %v615_v51 }
 0x7e4   :  { %v620_v47 = vsel %vm619_vm7, %v1869_v38, %v616_v43 }
 0x7e5   :  { %v625_v48 = vsel %vm622_vm8, %v624_v45, %v620_v47 }
 0x7e6   :  { %v627_v0 = vmul.f32 2.0, %v625_v48 }
 0x7e8   :  { %v1763_v49 = vadd.f32 -1.0, %v627_v0 }
 0x7ea   :  { %v629_v1 = vsel %vm2076_vm12, %v1763_v49, %v625_v48 }
 0x7eb   :  { %632 = vrot.lane.b32.xlu2 %v629_v1, %s1959_s15  ;;  %v630_v53 = vmul.f32 %v629_v1, %v2257_v29 }
 0x845   :  { %v633_v3 = vpop.permute.xlu2 %632 }
 0x846   :  { %v635_v6 = vmul.f32 %v633_v3, %v629_v1 }
 0x848   :  { %637 = vrot.lane.b32.xlu1 %v635_v6, %s1960_s18 }
 0x84d   :  { %v757_v50 = vpop.permute.xlu1 %756 }
 0x84e   :  { %v759_v52 = vmul.f32 %v757_v50, %v753_v41 }
 0x850   :  { %761 = vrot.lane.b32.xlu0 %v759_v52, %s1960_s18 }
 0x8ba   :  { %v638_v8 = vpop.permute.xlu1 %637 }
 0x8bb   :  { %v2300_v55 = vadd.f32 %v638_v8, %v630_v53 }
 0x8bd   :  { %1870 = vtanh.f32 %v2300_v55 }
 0x8c2   :  { %v762_v56 = vpop.permute.xlu0 %761 }
 0x8c3   :  { %v1871_v57 = vpop.eup %1870  ;;  %v2304_v58 = vadd.f32 %v762_v56, %v754_v9 }
 0x8c4   :  { %643 = vrot.lane.b32.xlu0 %v1871_v57, %s1959_s15 }
 0x8c5   :  { %1872 = vtanh.f32 %v2304_v58 }
 0x8cb   :  { %v1873_v59 = vpop.eup %1872 }
 0x8cc   :  { %767 = vrot.lane.b32.xlu2 %v1873_v59, %s1959_s15 }
 0x926   :  { %v768_v60 = vpop.permute.xlu2 %767 }
 0x927   :  { %v770_v29 = vmul.f32 %v768_v60, %v753_v41 }
 0x929   :  { %772 = vrot.lane.b32.xlu1 %v770_v29, %s1960_s18 }
 0x936   :  { %v644_v33 = vpop.permute.xlu0 %643 }
 0x937   :  { %v646_v13 = vmul.f32 %v644_v33, %v629_v1 }
 0x939   :  { %v1595_v4 = vrot.slane %v646_v13, 1  ;;  %v1606_v2 = vperm.slane %v646_v13, 0  ;;  %668 = vrot.lane.b32.xlu2 %v646_v13, %s1960_s18 }
 0x93b   :  { %v1607_v21 = vperm.slane %v1595_v4, 0  ;;  %v2316_v22 = vsel %vm1633_vm10, %v1631_v20, %v1606_v2 }
 0x93d   :  { %v2319_v44 = vsel %vm1633_vm10, %v1632_v23, %v1607_v21 }
 0x993   :  { %v669_v24 = vpop.permute.xlu2 %668 }
 0x994   :  { %1765 = vmatmul.msk.f32.vlgmr.msra.gmra.mxu2 %vm69_vm1, %v669_v24 }
 0x995   :  { %1226 = vmatpush.msra.mxu2 %v2325_v25 }
 0x997   :  { %1227 = vmatpush.msra.mxu2 %v2331_v61 }
 0x999   :  { %1228 = vmatpush.msra.mxu2 %v2337_v26 }
 0x99b   :  { %v773_v27 = vpop.permute.xlu1 %772  ;;  %1229 = vmatpush.msra.mxu2 %v2343_v28 }
 0x99c   :  { %1770 = vmatmul.msk.f32.vlgmr.msra.gmra.mxu3 %vm69_vm1, %v773_v27  ;;  %1773 = vmatmul.msk.f32.vlgmr.msra.gmra.mxu0 %vm69_vm1, %v773_v27 }
 0x99d   :  { %1355 = vmatpush.msra.mxu0 %v2107_v63  ;;  %1251 = vmatpush.msra.mxu3 %v2118_v7  ;;  %v2359_v63 = vld [vmem:[%s2592_s0] sm:$0xff]  ;;  %v2365_v7 = vld [vmem:[%s2592_s0 + $0x8] sm:$0xff] }
 0x99f   :  { %1356 = vmatpush.msra.mxu0 %v2112_v5  ;;  %1252 = vmatpush.msra.mxu3 %v2145_v15 }
 0x9a1   :  { %1357 = vmatpush.msra.mxu0 %v2123_v10  ;;  %1253 = vmatpush.msra.mxu3 %v2150_v16 }
 0x9a3   :  { %1358 = vmatpush.msra.mxu0 %v2132_v11  ;;  %1254 = vmatpush.msra.mxu3 %v2157_v17 }
 0xa17   :  { %v689_v16 = vpop.f32.mrf.mxu2 }
 0xa19   :  { %v853_v30 = vpop.f32.mrf.mxu0 }
 0xa1a   :  { %v882_v31 = vrot.slane %v853_v30, 4  ;;  %v883_v32 = vrot.slane %v853_v30, 5 }
 0xa1c   :  { %v886_v5 = vadd.f32 %v2359_v63, %v882_v31  ;;  %v887_v10 = vadd.f32 %v2365_v7, %v883_v32 }
 0xa1e   :  { %v1775_v11 = vmul.f32 -1.442695, %v886_v5  ;;  %v1776_v15 = vmul.f32 -1.442695, %v887_v10 }
 0xa1f   :  { %v793_v17 = vpop.f32.mrf.mxu3 }
 0xa20   :  { %1874 = vpow2.f32 %v1775_v11  ;;  %v794_v34 = vadd.f32 %v793_v17, %v689_v16 }
 0xa21   :  { %1876 = vpow2.f32 %v1776_v15 }
 0xa22   :  { %v796_v35 = vadd.f32 %v2194_v19, %v794_v34 }
 0xa24   :  { %v1771_v36 = vmul.f32 -1.442695, %v796_v35 }
 0xa26   :  { %v1875_v37 = vpop.eup %1874  ;;  %1878 = vpow2.f32 %v1771_v36 }
 0xa27   :  { %v1877_v41 = vpop.eup %1876  ;;  %v894_v38 = vadd.f32 1.0, %v1875_v37 }
 0xa28   :  { %v895_v39 = vadd.f32 1.0, %v1877_v41 }
 0xa29   :  { %1880 = vrcp.f32 %v894_v38  ;;  %v905_v0 = vand.u32 2147483647, %v894_v38  ;;  %v907_v49 = vand.u32 2147483648, %v894_v38  ;;  %vm901_vm14 = vweird.f32 %v894_v38 }
 0xa2a   :  { %1882 = vrcp.f32 %v895_v39  ;;  %v920_v1 = vand.u32 2147483647, %v895_v39  ;;  %v922_v3 = vand.u32 2147483648, %v895_v39  ;;  %vm916_vm3 = vweird.f32 %v895_v39 }
 0xa2b   :  { %vm906_vm2 = vcmp.eq.f32.partialorder %v905_v0, 8.507059e+37  ;;  %v908_v8 = vor.u32 1.1754944e-38, %v907_v49 }
 0xa2c   :  { %v1879_v40 = vpop.eup %1878  ;;  %vm921_vm5 = vcmp.eq.f32.partialorder %v920_v1, 8.507059e+37  ;;  %v923_v57 = vor.u32 1.1754944e-38, %v922_v3 }
 0xa2d   :  { %v800_v54 = vadd.f32 1.0, %v1879_v40 }
 0xa2f   :  { %v1881_v51 = vpop.eup %1880  ;;  %1884 = vrcp.f32 %v800_v54  ;;  %v810_v62 = vand.u32 2147483647, %v800_v54  ;;  %v812_v12 = vand.u32 2147483648, %v800_v54  ;;  %vm806_vm7 = vweird.f32 %v800_v54 }
 0xa30   :  { %v1883_v42 = vpop.eup %1882  ;;  %v897_v43 = vmul.f32 %v1881_v51, %v894_v38  ;;  %vm902_vm11 = vweird.f32 %v1881_v51 }
 0xa31   :  { %v912_v45 = vmul.f32 %v1883_v42, %v895_v39  ;;  %vm917_vm13 = vweird.f32 %v1883_v42  ;;  %vm903_vm15 = vmor %vm901_vm14, %vm902_vm11  ;;  %v813_v24 = vor.u32 1.1754944e-38, %v812_v12  ;;  %vm811_vm10 = vcmp.eq.f32.partialorder %v810_v62, 8.507059e+37 }
 0xa32   :  { %v898_v47 = vsub.f32 1.0, %v897_v43  ;;  %vm918_vm4 = vmor %vm916_vm3, %vm917_vm13  ;;  %vm1636_vm11 = vcmask 1042432  }
 0xa33   :  { %v913_v48 = vsub.f32 1.0, %v912_v45 }
 0xa34   :  { %v899_v19 = vmul.f32 %v1881_v51, %v898_v47 }
 0xa35   :  { %v1885_v6 = vpop.eup %1884  ;;  %v914_v50 = vmul.f32 %v1883_v42, %v913_v48 }
 0xa36   :  { %v900_v52 = vadd.f32 %v1881_v51, %v899_v19  ;;  %v802_v53 = vmul.f32 %v1885_v6, %v800_v54  ;;  %vm807_vm6 = vweird.f32 %v1885_v6 }
 0xa37   :  { %v915_v9 = vadd.f32 %v1883_v42, %v914_v50  ;;  %vm808_vm8 = vmor %vm806_vm7, %vm807_vm6  ;;  %v1950_v50 = vld [vmem:[%s2594_s2 + $0x18] sm:$0xff] }
 0xa38   :  { %v904_v56 = vsel %vm903_vm15, %v1881_v51, %v900_v52  ;;  %v803_v59 = vsub.f32 1.0, %v802_v53  ;;  %v1951_v52 = vld [vmem:[%s2595_s3 + $0x18] sm:$0xff]  ;;  %v1954_v53 = vld [vmem:[%s2594_s2 + $0x8] sm:$0xff] }
 0xa39   :  { %v909_v60 = vsel %vm906_vm2, %v908_v8, %v904_v56  ;;  %v919_v29 = vsel %vm918_vm4, %v1883_v42, %v915_v9  ;;  %v1956_v8 = vld [vmem:[%s2594_s2] sm:$0xff] }
 0xa3a   :  { %v924_v33 = vsel %vm921_vm5, %v923_v57, %v919_v29  ;;  %v926_v13 = vmul.f32 2.0, %v909_v60  ;;  %v804_v14 = vmul.f32 %v1885_v6, %v803_v59  ;;  %v938_v21 = vrot.slane %v909_v60, 4 }
 0xa3b   :  { %v927_v4 = vmul.f32 2.0, %v924_v33  ;;  %v939_v23 = vrot.slane %v924_v33, 3 }
 0xa3c   :  { %v1777_v2 = vadd.f32 -1.0, %v926_v13  ;;  %v805_v18 = vadd.f32 %v1885_v6, %v804_v14 }
 0xa3d   :  { %v1778_v20 = vadd.f32 -1.0, %v927_v4  ;;  %v940_v11 = vsel %vm67_vm0, %v939_v23, %v938_v21 }
 0xa3e   :  { %v932_v27 = vrot.slane %v1777_v2, 4  ;;  %v809_v30 = vsel %vm808_vm8, %v1885_v6, %v805_v18 }
 0xa3f   :  { %v933_v31 = vrot.slane %v1778_v20, 3  ;;  %v814_v32 = vsel %vm811_vm10, %v813_v24, %v809_v30 }
 0xa40   :  { %v816_v5 = vmul.f32 2.0, %v814_v32 }
 0xa41   :  { %v934_v10 = vsel %vm67_vm0, %v933_v31, %v932_v27 }
 0xa42   :  { %v942_v15 = vsel %vm2076_vm12, %v934_v10, %v940_v11  ;;  %v1772_v16 = vadd.f32 -1.0, %v816_v5 }
 0xa43   :  { %945 = vrot.lane.b32.xlu0 %v942_v15, %s1959_s15  ;;  %v943_v41 = vmul.f32 %v942_v15, %v2304_v58 }
 0xa44   :  { %v818_v17 = vsel %vm2076_vm12, %v1772_v16, %v814_v32 }
 0xa45   :  { %821 = vrot.lane.b32.xlu1 %v818_v17, %s1959_s15  ;;  %v819_v54 = vmul.f32 %v818_v17, %v2300_v55 }
 0xab5   :  { %v946_v34 = vpop.permute.xlu0 %945 }
 0xab6   :  { %v948_v35 = vmul.f32 %v946_v34, %v942_v15 }
 0xab7   :  { %v822_v36 = vpop.permute.xlu1 %821 }
 0xab8   :  { %v824_v37 = vmul.f32 %v822_v36, %v818_v17  ;;  %950 = vrot.lane.b32.xlu2 %v948_v35, %s1960_s18 }
 0xaba   :  { %826 = vrot.lane.b32.xlu0 %v824_v37, %s1960_s18 }
 0xb12   :  { %v951_v38 = vpop.permute.xlu2 %950 }
 0xb13   :  { %v2380_v39 = vadd.f32 %v951_v38, %v943_v41 }
 0xb15   :  { %1886 = vtanh.f32 %v2380_v39 }
 0xb1b   :  { %v1887_v40 = vpop.eup %1886 }
 0xb1c   :  { %956 = vrot.lane.b32.xlu1 %v1887_v40, %s1959_s15 }
 0xb2c   :  { %v827_v51 = vpop.permute.xlu0 %826 }
 0xb2d   :  { %v2385_v42 = vadd.f32 %v827_v51, %v819_v54 }
 0xb2f   :  { %1888 = vtanh.f32 %v2385_v42 }
 0xb35   :  { %v1889_v43 = vpop.eup %1888 }
 0xb36   :  { %832 = vrot.lane.b32.xlu2 %v1889_v43, %s1959_s15 }
 0xb8e   :  { %v957_v45 = vpop.permute.xlu1 %956 }
 0xb8f   :  { %v959_v58 = vmul.f32 %v957_v45, %v942_v15 }
 0xb90   :  { %v833_v47 = vpop.permute.xlu2 %832 }
 0xb91   :  { %961 = vrot.lane.b32.xlu0 %v959_v58, %s1960_s18  ;;  %v835_v48 = vmul.f32 %v833_v47, %v818_v17 }
 0xb93   :  { %v1596_v0 = vrot.slane %v835_v48, 1  ;;  %v1610_v49 = vperm.slane %v835_v48, 0  ;;  %857 = vrot.lane.b32.xlu1 %v835_v48, %s1960_s18 }
 0xb95   :  { %v1611_v55 = vperm.slane %v1596_v0, 0  ;;  %v2392_v19 = vsel %vm1636_vm11, %v2316_v22, %v1610_v49  ;;  %v1952_v22 = vld [vmem:[%s2594_s2 + $0x10] sm:$0xff] }
 0xb97   :  { %v2395_v1 = vsel %vm1636_vm11, %v2319_v44, %v1611_v55  ;;  %v1953_v44 = vld [vmem:[%s2595_s3 + $0x10] sm:$0xff] }
 0xc03   :  { %v962_v3 = vpop.permute.xlu0 %961 }
 0xc04   :  { %1779 = vmatmul.msk.f32.vlgmr.msrb.gmra.mxu2 %vm69_vm1, %v962_v3  ;;  %1782 = vmatmul.msk.f32.vlgmr.msrb.gmra.mxu3 %vm69_vm1, %v962_v3 }
 0xc05   :  { %v858_v6 = vpop.permute.xlu1 %857  ;;  %1544 = vmatpush.msrb.mxu3 %v1950_v50  ;;  %1440 = vmatpush.msrb.mxu2 %v1951_v52 }
 0xc06   :  { %1774 = vmatmul.msk.f32.vlgmr.msra.gmra.mxu1 %vm69_vm1, %v858_v6 }
 0xc07   :  { %1415 = vmatpush.msra.mxu1 %v2325_v25  ;;  %1545 = vmatpush.msrb.mxu3 %v1952_v22  ;;  %v1955_v25 = vld [vmem:[%s2595_s3 + $0x8] sm:$0xff] }
 0xc08   :  { %1441 = vmatpush.msrb.mxu2 %v1953_v44 }
 0xc09   :  { %1416 = vmatpush.msra.mxu1 %v2331_v61  ;;  %1546 = vmatpush.msrb.mxu3 %v1954_v53  ;;  %v1957_v61 = vld [vmem:[%s2595_s3] sm:$0xff] }
 0xc0a   :  { %1442 = vmatpush.msrb.mxu2 %v1955_v25 }
 0xc0b   :  { %1417 = vmatpush.msra.mxu1 %v2337_v26  ;;  %1547 = vmatpush.msrb.mxu3 %v1956_v8  ;;  %v2431_v26 = vld [vmem:[%s2596_s4] ss:$0 sm:$0xff] }
 0xc0c   :  { %1443 = vmatpush.msrb.mxu2 %v1957_v61 }
 0xc0d   :  { %1418 = vmatpush.msra.mxu1 %v2343_v28 }
 0xc83   :  { %v878_v9 = vpop.f32.mrf.mxu1 }
 0xc87   :  { %v982_v56 = vpop.f32.mrf.mxu2  ;;  %v1042_v57 = vpop.f32.mrf.mxu3 }
 0xc88   :  { %v983_v59 = vadd.f32 %v982_v56, %v878_v9  ;;  %v1071_v60 = vrot.slane %v1042_v57, 3  ;;  %v1072_v29 = vrot.slane %v1042_v57, 4 }
 0xc8a   :  { %v985_v62 = vadd.f32 %v2431_v26, %v983_v59  ;;  %v1075_v12 = vadd.f32 %v2359_v63, %v1071_v60  ;;  %v1076_v33 = vadd.f32 %v2365_v7, %v1072_v29 }
 0xc8c   :  { %v1780_v13 = vmul.f32 -1.442695, %v985_v62  ;;  %v1784_v14 = vmul.f32 -1.442695, %v1075_v12  ;;  %v1785_v28 = vmul.f32 -1.442695, %v1076_v33 }
 0xc8e   :  { %1890 = vpow2.f32 %v1780_v13 }
 0xc8f   :  { %1892 = vpow2.f32 %v1784_v14 }
 0xc90   :  { %1894 = vpow2.f32 %v1785_v28 }
 0xc94   :  { %v1891_v4 = vpop.eup %1890 }
 0xc95   :  { %v1893_v2 = vpop.eup %1892  ;;  %v989_v18 = vadd.f32 1.0, %v1891_v4 }
 0xc96   :  { %v1895_v20 = vpop.eup %1894  ;;  %v1083_v21 = vadd.f32 1.0, %v1893_v2 }
 0xc97   :  { %1896 = vrcp.f32 %v989_v18  ;;  %v1084_v23 = vadd.f32 1.0, %v1895_v20  ;;  %vm995_vm13 = vweird.f32 %v989_v18  ;;  %v999_v15 = vand.u32 2147483647, %v989_v18 }
 0xc98   :  { %1898 = vrcp.f32 %v1083_v21  ;;  %v1001_v16 = vand.u32 2147483648, %v989_v18  ;;  %v1096_v35 = vand.u32 2147483648, %v1083_v21  ;;  %v1094_v37 = vand.u32 2147483647, %v1083_v21 }
 0xc99   :  { %1900 = vrcp.f32 %v1084_v23  ;;  %v1111_v41 = vand.u32 2147483648, %v1084_v23  ;;  %v1109_v54 = vand.u32 2147483647, %v1084_v23  ;;  %vm1000_vm4 = vcmp.eq.f32.partialorder %v999_v15, 8.507059e+37 }
 0xc9a   :  { %v1002_v51 = vor.u32 1.1754944e-38, %v1001_v16  ;;  %vm1090_vm5 = vweird.f32 %v1083_v21  ;;  %v1097_v58 = vor.u32 1.1754944e-38, %v1096_v35  ;;  %vm1105_vm7 = vweird.f32 %v1084_v23 }
 0xc9b   :  { %vm1095_vm8 = vcmp.eq.f32.partialorder %v1094_v37, 8.507059e+37  ;;  %v1112_v49 = vor.u32 1.1754944e-38, %v1111_v41  ;;  %vm1110_vm11 = vcmp.eq.f32.partialorder %v1109_v54, 8.507059e+37 }
 0xc9d   :  { %v1897_v24 = vpop.eup %1896 }
 0xc9e   :  { %v1899_v27 = vpop.eup %1898  ;;  %v991_v30 = vmul.f32 %v1897_v24, %v989_v18  ;;  %vm996_vm14 = vweird.f32 %v1897_v24 }
 0xc9f   :  { %v1901_v31 = vpop.eup %1900  ;;  %v1086_v32 = vmul.f32 %v1899_v27, %v1083_v21  ;;  %vm1091_vm15 = vweird.f32 %v1899_v27  ;;  %vm997_vm3 = vmor %vm995_vm13, %vm996_vm14  ;;  %vm1639_vm13 = vcmask 1043456  }
 0xca0   :  { %v1101_v5 = vmul.f32 %v1901_v31, %v1084_v23  ;;  %v992_v10 = vsub.f32 1.0, %v991_v30  ;;  %vm1106_vm2 = vweird.f32 %v1901_v31  ;;  %vm1092_vm6 = vmor %vm1090_vm5, %vm1091_vm15 }
 0xca1   :  { %v1087_v11 = vsub.f32 1.0, %v1086_v32  ;;  %vm1107_vm10 = vmor %vm1105_vm7, %vm1106_vm2 }
 0xca2   :  { %v1102_v17 = vsub.f32 1.0, %v1101_v5  ;;  %v993_v34 = vmul.f32 %v1897_v24, %v992_v10 }
 0xca3   :  { %v1088_v36 = vmul.f32 %v1899_v27, %v1087_v11 }
 0xca4   :  { %v994_v38 = vadd.f32 %v1897_v24, %v993_v34  ;;  %v1103_v40 = vmul.f32 %v1901_v31, %v1102_v17 }
 0xca5   :  { %v1089_v43 = vadd.f32 %v1899_v27, %v1088_v36 }
 0xca6   :  { %v998_v45 = vsel %vm997_vm3, %v1897_v24, %v994_v38  ;;  %v1104_v47 = vadd.f32 %v1901_v31, %v1103_v40 }
 0xca7   :  { %v1003_v48 = vsel %vm1000_vm4, %v1002_v51, %v998_v45  ;;  %v1093_v0 = vsel %vm1092_vm6, %v1899_v27, %v1089_v43 }
 0xca8   :  { %v1005_v55 = vmul.f32 2.0, %v1003_v48  ;;  %v1098_v3 = vsel %vm1095_vm8, %v1097_v58, %v1093_v0  ;;  %v1108_v6 = vsel %vm1107_vm10, %v1901_v31, %v1104_v47 }
 0xca9   :  { %v1113_v50 = vsel %vm1110_vm11, %v1112_v49, %v1108_v6  ;;  %v1115_v52 = vmul.f32 2.0, %v1098_v3  ;;  %v1127_v61 = vrot.slane %v1098_v3, 5 }
 0xcaa   :  { %v1781_v22 = vadd.f32 -1.0, %v1005_v55  ;;  %v1116_v44 = vmul.f32 2.0, %v1113_v50  ;;  %v1128_v9 = vrot.slane %v1113_v50, 4 }
 0xcab   :  { %v1786_v53 = vadd.f32 -1.0, %v1115_v52 }
 0xcac   :  { %v1007_v25 = vsel %vm2076_vm12, %v1781_v22, %v1003_v48  ;;  %v1787_v8 = vadd.f32 -1.0, %v1116_v44  ;;  %v1129_v60 = vsel %vm67_vm0, %v1128_v9, %v1127_v61 }
 0xcad   :  { %1010 = vrot.lane.b32.xlu0 %v1007_v25, %s1959_s15  ;;  %v1121_v56 = vrot.slane %v1786_v53, 5  ;;  %v1008_v14 = vmul.f32 %v1007_v25, %v2385_v42 }
 0xcae   :  { %v1122_v57 = vrot.slane %v1787_v8, 4 }
 0xcb0   :  { %v1123_v59 = vsel %vm67_vm0, %v1122_v57, %v1121_v56 }
 0xcb1   :  { %v1131_v29 = vsel %vm2076_vm12, %v1123_v59, %v1129_v60 }
 0xcb2   :  { %1134 = vrot.lane.b32.xlu2 %v1131_v29, %s1959_s15  ;;  %v1132_v2 = vmul.f32 %v1131_v29, %v2380_v39 }
 0xd0c   :  { %v1135_v62 = vpop.permute.xlu2 %1134 }
 0xd0d   :  { %v1137_v12 = vmul.f32 %v1135_v62, %v1131_v29 }
 0xd0f   :  { %1139 = vrot.lane.b32.xlu1 %v1137_v12, %s1960_s18 }
 0xd1f   :  { %v1011_v33 = vpop.permute.xlu0 %1010 }
 0xd20   :  { %v1013_v13 = vmul.f32 %v1011_v33, %v1007_v25 }
 0xd22   :  { %1015 = vrot.lane.b32.xlu2 %v1013_v13, %s1960_s18 }
 0xd7c   :  { %v1016_v28 = vpop.permute.xlu2 %1015 }
 0xd7d   :  { %v2449_v4 = vadd.f32 %v1016_v28, %v1008_v14 }
 0xd7f   :  { %1902 = vtanh.f32 %v2449_v4 }
 0xd81   :  { %v1140_v18 = vpop.permute.xlu1 %1139 }
 0xd82   :  { %v2453_v20 = vadd.f32 %v1140_v18, %v1132_v2 }
 0xd84   :  { %1904 = vtanh.f32 %v2453_v20 }
 0xd85   :  { %v1903_v21 = vpop.eup %1902 }
 0xd86   :  { %1021 = vrot.lane.b32.xlu1 %v1903_v21, %s1959_s15 }
 0xd8a   :  { %v1905_v23 = vpop.eup %1904 }
 0xd8b   :  { %1145 = vrot.lane.b32.xlu0 %v1905_v23, %s1959_s15 }
 0xdf8   :  { %v1022_v24 = vpop.permute.xlu1 %1021 }
 0xdf9   :  { %v1024_v42 = vmul.f32 %v1022_v24, %v1007_v25 }
 0xdfb   :  { %v1597_v27 = vrot.slane %v1024_v42, 1  ;;  %v1614_v30 = vperm.slane %v1024_v42, 0  ;;  %1046 = vrot.lane.b32.xlu0 %v1024_v42, %s1960_s18 }
 0xdfd   :  { %v1615_v31 = vperm.slane %v1597_v27, 0  ;;  %v1146_v39 = vpop.permute.xlu0 %1145  ;;  %v2460_v32 = vsel %vm1639_vm13, %v2392_v19, %v1614_v30 }
 0xdfe   :  { %v1148_v5 = vmul.f32 %v1146_v39, %v1131_v29 }
 0xdff   :  { %v2463_v10 = vsel %vm1639_vm13, %v2395_v1, %v1615_v31 }
 0xe00   :  { %1150 = vrot.lane.b32.xlu2 %v1148_v5, %s1960_s18 }
 0xe5a   :  { %v1151_v11 = vpop.permute.xlu2 %1150 }
 0xe5b   :  { %1788 = vmatmul.msk.f32.vlgmr.msrb.gmra.mxu1 %vm69_vm1, %v1151_v11  ;;  %1791 = vmatmul.msk.f32.vlgmr.msra.gmra.mxu2 %vm69_vm1, %v1151_v11 }
 0xe6d   :  { %v1047_v15 = vpop.permute.xlu0 %1046 }
 0xe6e   :  { %1783 = vmatmul.msk.f32.vlgmr.msrb.gmra.mxu0 %vm69_vm1, %v1047_v15 }
 0xed8   :  { %v1171_v41 = vpop.f32.mrf.mxu1 }
 0xede   :  { %v1231_v16 = vpop.f32.mrf.mxu2 }
 0xedf   :  { %v1260_v17 = vrot.slane %v1231_v16, 2  ;;  %v1261_v34 = vrot.slane %v1231_v16, 3 }
 0xee1   :  { %v1264_v19 = vadd.f32 %v2359_v63, %v1260_v17  ;;  %v1265_v35 = vadd.f32 %v2365_v7, %v1261_v34 }
 0xee3   :  { %v1793_v36 = vmul.f32 -1.442695, %v1264_v19  ;;  %v1794_v1 = vmul.f32 -1.442695, %v1265_v35 }
 0xee5   :  { %1906 = vpow2.f32 %v1793_v36 }
 0xee6   :  { %1908 = vpow2.f32 %v1794_v1 }
 0xeeb   :  { %v1907_v37 = vpop.eup %1906  ;;  %v1067_v38 = vpop.f32.mrf.mxu0 }
 0xeec   :  { %v1909_v40 = vpop.eup %1908  ;;  %v1272_v54 = vadd.f32 1.0, %v1907_v37  ;;  %v1172_v51 = vadd.f32 %v1171_v41, %v1067_v38 }
 0xeed   :  { %v1273_v43 = vadd.f32 1.0, %v1909_v40 }
 0xeee   :  { %1910 = vrcp.f32 %v1272_v54  ;;  %v1174_v45 = vadd.f32 %v2431_v26, %v1172_v51  ;;  %v1283_v50 = vand.u32 2147483647, %v1272_v54  ;;  %v1285_v52 = vand.u32 2147483648, %v1272_v54 }
 0xeef   :  { %1912 = vrcp.f32 %v1273_v43  ;;  %v1300_v53 = vand.u32 2147483648, %v1273_v43  ;;  %v1298_v8 = vand.u32 2147483647, %v1273_v43  ;;  %vm1279_vm2 = vweird.f32 %v1272_v54 }
 0xef0   :  { %v1789_v58 = vmul.f32 -1.442695, %v1174_v45  ;;  %v1286_v9 = vor.u32 1.1754944e-38, %v1285_v52  ;;  %vm1294_vm4 = vweird.f32 %v1273_v43  ;;  %vm1284_vm5 = vcmp.eq.f32.partialorder %v1283_v50, 8.507059e+37 }
 0xef1   :  { %v1301_v59 = vor.u32 1.1754944e-38, %v1300_v53  ;;  %vm1299_vm7 = vcmp.eq.f32.partialorder %v1298_v8, 8.507059e+37 }
 0xef2   :  { %1914 = vpow2.f32 %v1789_v58 }
 0xef4   :  { %v1911_v47 = vpop.eup %1910 }
 0xef5   :  { %v1913_v48 = vpop.eup %1912  ;;  %v1275_v0 = vmul.f32 %v1911_v47, %v1272_v54  ;;  %vm1280_vm14 = vweird.f32 %v1911_v47 }
 0xef6   :  { %v1290_v49 = vmul.f32 %v1913_v48, %v1273_v43  ;;  %vm1295_vm15 = vweird.f32 %v1913_v48  ;;  %vm1281_vm3 = vmor %vm1279_vm2, %vm1280_vm14  ;;  %vm1642_vm14 = vcmask 1044480  }
 0xef7   :  { %v1276_v55 = vsub.f32 1.0, %v1275_v0  ;;  %vm1296_vm6 = vmor %vm1294_vm4, %vm1295_vm15 }
 0xef8   :  { %v1915_v3 = vpop.eup %1914  ;;  %v1291_v6 = vsub.f32 1.0, %v1290_v49 }
 0xef9   :  { %v1178_v22 = vadd.f32 1.0, %v1915_v3  ;;  %v1277_v44 = vmul.f32 %v1911_v47, %v1276_v55 }
 0xefa   :  { %v1292_v25 = vmul.f32 %v1913_v48, %v1291_v6 }
 0xefb   :  { %1916 = vrcp.f32 %v1178_v22  ;;  %v1278_v61 = vadd.f32 %v1911_v47, %v1277_v44  ;;  %v1188_v27 = vand.u32 2147483647, %v1178_v22  ;;  %v1190_v30 = vand.u32 2147483648, %v1178_v22 }
 0xefc   :  { %v1293_v56 = vadd.f32 %v1913_v48, %v1292_v25  ;;  %vm1184_vm10 = vweird.f32 %v1178_v22 }
 0xefd   :  { %v1282_v57 = vsel %vm1281_vm3, %v1911_v47, %v1278_v61  ;;  %v1191_v16 = vor.u32 1.1754944e-38, %v1190_v30  ;;  %vm1189_vm13 = vcmp.eq.f32.partialorder %v1188_v27, 8.507059e+37 }
 0xefe   :  { %v1287_v60 = vsel %vm1284_vm5, %v1286_v9, %v1282_v57  ;;  %v1297_v29 = vsel %vm1296_vm6, %v1913_v48, %v1293_v56 }
 0xeff   :  { %v1302_v62 = vsel %vm1299_vm7, %v1301_v59, %v1297_v29  ;;  %v1304_v12 = vmul.f32 2.0, %v1287_v60  ;;  %v1316_v2 = vrot.slane %v1287_v60, 6 }
 0xf00   :  { %v1305_v33 = vmul.f32 2.0, %v1302_v62  ;;  %v1317_v18 = vrot.slane %v1302_v62, 5 }
 0xf01   :  { %v1917_v13 = vpop.eup %1916  ;;  %v1795_v14 = vadd.f32 -1.0, %v1304_v12 }
 0xf02   :  { %v1796_v28 = vadd.f32 -1.0, %v1305_v33  ;;  %v1180_v21 = vmul.f32 %v1917_v13, %v1178_v22  ;;  %v1318_v39 = vsel %vm67_vm0, %v1317_v18, %v1316_v2  ;;  %vm1185_vm8 = vweird.f32 %v1917_v13 }
 0xf03   :  { %v1310_v23 = vrot.slane %v1795_v14, 6  ;;  %vm1186_vm11 = vmor %vm1184_vm10, %vm1185_vm8 }
 0xf04   :  { %v1311_v24 = vrot.slane %v1796_v28, 5  ;;  %v1181_v42 = vsub.f32 1.0, %v1180_v21 }
 0xf06   :  { %v1312_v31 = vsel %vm67_vm0, %v1311_v24, %v1310_v23  ;;  %v1182_v5 = vmul.f32 %v1917_v13, %v1181_v42 }
 0xf07   :  { %v1320_v11 = vsel %vm2076_vm12, %v1312_v31, %v1318_v39 }
 0xf08   :  { %1323 = vrot.lane.b32.xlu2 %v1320_v11, %s1959_s15  ;;  %v1183_v15 = vadd.f32 %v1917_v13, %v1182_v5  ;;  %v1321_v40 = vmul.f32 %v1320_v11, %v2453_v20 }
 0xf0a   :  { %v1187_v17 = vsel %vm1186_vm11, %v1917_v13, %v1183_v15 }
 0xf0b   :  { %v1192_v34 = vsel %vm1189_vm13, %v1191_v16, %v1187_v17 }
 0xf0c   :  { %v1194_v19 = vmul.f32 2.0, %v1192_v34 }
 0xf0e   :  { %v1790_v35 = vadd.f32 -1.0, %v1194_v19 }
 0xf10   :  { %v1196_v36 = vsel %vm2076_vm12, %v1790_v35, %v1192_v34 }
 0xf11   :  { %1199 = vrot.lane.b32.xlu1 %v1196_v36, %s1959_s15  ;;  %v1197_v45 = vmul.f32 %v1196_v36, %v2449_v4 }
 0xf62   :  { %v1324_v1 = vpop.permute.xlu2 %1323 }
 0xf63   :  { %v1326_v37 = vmul.f32 %v1324_v1, %v1320_v11 }
 0xf65   :  { %1328 = vrot.lane.b32.xlu1 %v1326_v37, %s1960_s18 }
 0xf83   :  { %v1200_v41 = vpop.permute.xlu1 %1199 }
 0xf84   :  { %v1202_v38 = vmul.f32 %v1200_v41, %v1196_v36 }
 0xf86   :  { %1204 = vrot.lane.b32.xlu0 %v1202_v38, %s1960_s18 }
 0xfd7   :  { %v1329_v54 = vpop.permute.xlu1 %1328 }
 0xfd8   :  { %v2483_v51 = vadd.f32 %v1329_v54, %v1321_v40 }
 0xfda   :  { %1918 = vtanh.f32 %v2483_v51 }
 0xfe0   :  { %v1919_v43 = vpop.eup %1918 }
 0xfe1   :  { %1334 = vrot.lane.b32.xlu0 %v1919_v43, %s1959_s15 }
 0xff8   :  { %v1205_v58 = vpop.permute.xlu0 %1204 }
 0xff9   :  { %v2488_v47 = vadd.f32 %v1205_v58, %v1197_v45 }
 0xffb   :  { %1920 = vtanh.f32 %v2488_v47 }
0x1001   :  { %v1921_v48 = vpop.eup %1920 }
0x1002   :  { %1210 = vrot.lane.b32.xlu2 %v1921_v48, %s1959_s15 }
0x1053   :  { %v1335_v0 = vpop.permute.xlu0 %1334 }
0x1054   :  { %v1337_v20 = vmul.f32 %v1335_v0, %v1320_v11 }
0x1056   :  { %1339 = vrot.lane.b32.xlu2 %v1337_v20, %s1960_s18 }
0x105c   :  { %v1211_v49 = vpop.permute.xlu2 %1210 }
0x105d   :  { %v1213_v55 = vmul.f32 %v1211_v49, %v1196_v36 }
0x105f   :  { %v1598_v3 = vrot.slane %v1213_v55, 1  ;;  %v1618_v6 = vperm.slane %v1213_v55, 0  ;;  %1235 = vrot.lane.b32.xlu1 %v1213_v55, %s1960_s18 }
0x1061   :  { %v1619_v4 = vperm.slane %v1598_v3, 0  ;;  %v2495_v50 = vsel %vm1642_vm14, %v2460_v32, %v1618_v6 }
0x1063   :  { %v2498_v52 = vsel %vm1642_vm14, %v2463_v10, %v1619_v4  ;;  %vm1645_vm14 = vcmask 1045504  }
0x10b0   :  { %v1340_v22 = vpop.permute.xlu2 %1339 }
0x10b1   :  { %1797 = vmatmul.msk.f32.vlgmr.msra.gmra.mxu0 %vm69_vm1, %v1340_v22  ;;  %1800 = vmatmul.msk.f32.vlgmr.msra.gmra.mxu1 %vm69_vm1, %v1340_v22 }
0x10d1   :  { %v1236_v44 = vpop.permute.xlu1 %1235 }
0x10d2   :  { %1792 = vmatmul.msk.f32.vlgmr.msra.gmra.mxu3 %vm69_vm1, %v1236_v44 }
0x112e   :  { %v1420_v53 = vpop.f32.mrf.mxu1  ;;  %v1360_v1 = vpop.f32.mrf.mxu0 }
0x112f   :  { %v1449_v25 = vrot.slane %v1420_v53, 1  ;;  %v1450_v8 = vrot.slane %v1420_v53, 2 }
0x1131   :  { %v1453_v61 = vadd.f32 %v2359_v63, %v1449_v25  ;;  %v1454_v9 = vadd.f32 %v2365_v7, %v1450_v8 }
0x1133   :  { %v1802_v32 = vmul.f32 -1.442695, %v1453_v61  ;;  %v1803_v56 = vmul.f32 -1.442695, %v1454_v9 }
0x1135   :  { %1922 = vpow2.f32 %v1802_v32 }
0x1136   :  { %1924 = vpow2.f32 %v1803_v56 }
0x113b   :  { %v1923_v10 = vpop.eup %1922 }
0x113c   :  { %v1925_v57 = vpop.eup %1924  ;;  %v1461_v59 = vadd.f32 1.0, %v1923_v10 }
0x113d   :  { %v1462_v60 = vadd.f32 1.0, %v1925_v57 }
0x113e   :  { %1926 = vrcp.f32 %v1461_v59  ;;  %v1474_v28 = vand.u32 2147483648, %v1461_v59  ;;  %v1472_v7 = vand.u32 2147483647, %v1461_v59  ;;  %vm1468_vm3 = vweird.f32 %v1461_v59 }
0x113f   :  { %1928 = vrcp.f32 %v1462_v60  ;;  %v1489_v2 = vand.u32 2147483648, %v1462_v60  ;;  %v1487_v21 = vand.u32 2147483647, %v1462_v60  ;;  %vm1483_vm5 = vweird.f32 %v1462_v60 }
0x1140   :  { %v1475_v24 = vor.u32 1.1754944e-38, %v1474_v28  ;;  %vm1473_vm6 = vcmp.eq.f32.partialorder %v1472_v7, 8.507059e+37 }
0x1141   :  { %v1490_v30 = vor.u32 1.1754944e-38, %v1489_v2  ;;  %vm1488_vm8 = vcmp.eq.f32.partialorder %v1487_v21, 8.507059e+37 }
0x1144   :  { %v1927_v29 = vpop.eup %1926 }
0x1145   :  { %v1929_v62 = vpop.eup %1928  ;;  %v1464_v12 = vmul.f32 %v1927_v29, %v1461_v59  ;;  %vm1469_vm15 = vweird.f32 %v1927_v29 }
0x1146   :  { %v1479_v33 = vmul.f32 %v1929_v62, %v1462_v60  ;;  %vm1484_vm2 = vweird.f32 %v1929_v62  ;;  %vm1470_vm4 = vmor %vm1468_vm3, %vm1469_vm15 }
0x1147   :  { %v1465_v13 = vsub.f32 1.0, %v1464_v12  ;;  %vm1485_vm7 = vmor %vm1483_vm5, %vm1484_vm2  ;;  %vm1701_vm5 = vcmask 254976  }
0x1148   :  { %v1480_v14 = vsub.f32 1.0, %v1479_v33 }
0x1149   :  { %v1466_v63 = vmul.f32 %v1927_v29, %v1465_v13 }
0x114a   :  { %v1481_v18 = vmul.f32 %v1929_v62, %v1480_v14 }
0x114b   :  { %v1467_v23 = vadd.f32 %v1927_v29, %v1466_v63 }
0x114c   :  { %v1482_v42 = vadd.f32 %v1929_v62, %v1481_v18 }
0x114d   :  { %v1471_v27 = vsel %vm1470_vm4, %v1927_v29, %v1467_v23 }
0x114e   :  { %v1476_v31 = vsel %vm1473_vm6, %v1475_v24, %v1471_v27  ;;  %v1486_v39 = vsel %vm1485_vm7, %v1929_v62, %v1482_v42 }
0x114f   :  { %v1491_v5 = vsel %vm1488_vm8, %v1490_v30, %v1486_v39  ;;  %v1493_v11 = vmul.f32 2.0, %v1476_v31  ;;  %v1505_v34 = vrot.slane %v1476_v31, 7 }
0x1150   :  { %v1494_v15 = vmul.f32 2.0, %v1491_v5  ;;  %v1506_v19 = vrot.slane %v1491_v5, 6 }
0x1151   :  { %v1804_v16 = vadd.f32 -1.0, %v1493_v11 }
0x1152   :  { %v1805_v17 = vadd.f32 -1.0, %v1494_v15  ;;  %v1507_v38 = vsel %vm67_vm0, %v1506_v19, %v1505_v34 }
0x1153   :  { %v1499_v35 = vrot.slane %v1804_v16, 7 }
0x1154   :  { %v1500_v36 = vrot.slane %v1805_v17, 6 }
0x1155   :  { %v1256_v37 = vpop.f32.mrf.mxu3 }
0x1156   :  { %v1501_v41 = vsel %vm67_vm0, %v1500_v36, %v1499_v35  ;;  %v1361_v40 = vadd.f32 %v1360_v1, %v1256_v37 }
0x1157   :  { %v1509_v54 = vsel %vm2076_vm12, %v1501_v41, %v1507_v38 }
0x1158   :  { %1512 = vrot.lane.b32.xlu1 %v1509_v54, %s1959_s15  ;;  %v1363_v43 = vadd.f32 %v2431_v26, %v1361_v40  ;;  %v1510_v57 = vmul.f32 %v1509_v54, %v2483_v51 }
0x115a   :  { %v1798_v45 = vmul.f32 -1.442695, %v1363_v43 }
0x115c   :  { %1930 = vpow2.f32 %v1798_v45 }
0x1162   :  { %v1931_v58 = vpop.eup %1930 }
0x1163   :  { %v1367_v48 = vadd.f32 1.0, %v1931_v58 }
0x1165   :  { %1932 = vrcp.f32 %v1367_v48  ;;  %v1379_v55 = vand.u32 2147483648, %v1367_v48  ;;  %v1377_v6 = vand.u32 2147483647, %v1367_v48  ;;  %vm1373_vm0 = vweird.f32 %v1367_v48 }
0x1167   :  { %v1380_v22 = vor.u32 1.1754944e-38, %v1379_v55  ;;  %vm1378_vm13 = vcmp.eq.f32.partialorder %v1377_v6, 8.507059e+37 }
0x116b   :  { %v1933_v0 = vpop.eup %1932 }
0x116c   :  { %v1369_v20 = vmul.f32 %v1933_v0, %v1367_v48  ;;  %vm1374_vm10 = vweird.f32 %v1933_v0  ;;  %v51_v48 = vld [vmem:[%s2597_s7 + $0x18] sm:$0xff] }
0x116d   :  { %vm1375_vm11 = vmor %vm1373_vm0, %vm1374_vm10  ;;  %1676 = vmatpush.msrb.mxu0 %v51_v48 }
0x116e   :  { %v1370_v49 = vsub.f32 1.0, %v1369_v20  ;;  %v48_v20 = vld [vmem:[%s2597_s7] sm:$0xff] }
0x116f   :  { %1677 = vmatpush.msrb.mxu0 %v50_v46 }
0x1170   :  { %v1371_v3 = vmul.f32 %v1933_v0, %v1370_v49 }
0x1172   :  { %v1372_v4 = vadd.f32 %v1933_v0, %v1371_v3 }
0x1174   :  { %v1376_v44 = vsel %vm1375_vm11, %v1933_v0, %v1372_v4  ;;  %v49_v0 = vld [vmem:[%s2597_s7 + $0x8] sm:$0xff]  ;;  %s1961_s7 = smov 96  }
0x1175   :  { %v1381_v53 = vsel %vm1378_vm13, %v1380_v22, %v1376_v44  ;;  %1678 = vmatpush.msrb.mxu0 %v49_v0 }
0x1176   :  { %v1383_v25 = vmul.f32 2.0, %v1381_v53 }
0x1177   :  { %1679 = vmatpush.msrb.mxu0 %v48_v20 }
0x1178   :  { %v1799_v8 = vadd.f32 -1.0, %v1383_v25 }
0x117a   :  { %v1385_v61 = vsel %vm2076_vm12, %v1799_v8, %v1381_v53 }
0x117b   :  { %1388 = vrot.lane.b32.xlu0 %v1385_v61, %s1959_s15  ;;  %v1386_v62 = vmul.f32 %v1385_v61, %v2488_v47 }
0x11ca   :  { %v1513_v9 = vpop.permute.xlu1 %1512 }
0x11cb   :  { %v1515_v32 = vmul.f32 %v1513_v9, %v1509_v54 }
0x11cd   :  { %1517 = vrot.lane.b32.xlu0 %v1515_v32, %s1960_s18 }
0x11ed   :  { %v1389_v56 = vpop.permute.xlu0 %1388 }
0x11ee   :  { %v1391_v10 = vmul.f32 %v1389_v56, %v1385_v61 }
0x11f0   :  { %1393 = vrot.lane.b32.xlu2 %v1391_v10, %s1960_s18 }
0x123f   :  { %v1518_v59 = vpop.permute.xlu0 %1517 }
0x1240   :  { %v2517_v60 = vadd.f32 %v1518_v59, %v1510_v57 }
0x1242   :  { %1934 = vtanh.f32 %v2517_v60 }
0x1248   :  { %v1935_v29 = vpop.eup %1934 }
0x1249   :  { %1523 = vrot.lane.b32.xlu2 %v1935_v29, %s1959_s15 }
0x124a   :  { %v1394_v12 = vpop.permute.xlu2 %1393 }
0x124b   :  { %v1396_v33 = vadd.f32 %v1394_v12, %v1386_v62 }
0x124d   :  { %1936 = vtanh.f32 %v1396_v33 }
0x1253   :  { %v1937_v13 = vpop.eup %1936 }
0x1254   :  { %1399 = vrot.lane.b32.xlu1 %v1937_v13, %s1959_s15  ;;  %v1815_v13 = vld [vmem:[%s2598_s8] ss:$0 sm:$0xff] }
0x12a3   :  { %v1524_v14 = vpop.permute.xlu2 %1523 }
0x12a4   :  { %v2523_v28 = vmul.f32 %v1524_v14, %v1509_v54 }
0x12a6   :  { %1528 = vrot.lane.b32.xlu1 %v2523_v28, %s1960_s18  ;;  %v1689_v9 = vrot.slane %v2523_v28, 1 }
0x12c6   :  { %v1400_v51 = vpop.permute.xlu1 %1399 }
0x12c7   :  { %v1402_v63 = vmul.f32 %v1400_v51, %v1385_v61  ;;  %v1705_v61 = vrot.slane %v2517_v60, 1 }
0x12c9   :  { %v1599_v7 = vrot.slane %v1402_v63, 1  ;;  %v1622_v2 = vperm.slane %v1402_v63, 0  ;;  %1424 = vrot.lane.b32.xlu0 %v1402_v63, %s1960_s18 }
0x12cb   :  { %v1623_v47 = vperm.slane %v1599_v7, 0  ;;  %v1646_v18 = vsel %vm1645_vm14, %v2495_v50, %v1622_v2 }
0x12cd   :  { %v2530_v21 = vsel %vm1645_vm14, %v2498_v52, %v1623_v47 }
0x1318   :  { %v1529_v23 = vpop.permute.xlu1 %1528 }
0x1319   :  { %1806 = vmatmul.msk.f32.vlgmr.msrb.gmra.mxu3 %vm69_vm1, %v1529_v23 }
0x133b   :  { %v1425_v24 = vpop.permute.xlu0 %1424 }
0x133c   :  { %1801 = vmatmul.msk.f32.vlgmr.msrb.gmra.mxu2 %vm69_vm1, %v1425_v24 }
0x139c   :  { %v1549_v42 = vpop.f32.mrf.mxu3 }
0x13bf   :  { %v1445_v27 = vpop.f32.mrf.mxu2 }
0x13c0   :  { %v1550_v30 = vadd.f32 %v1549_v42, %v1445_v27 }
0x13c2   :  { %v1552_v31 = vadd.f32 %v2431_v26, %v1550_v30 }
0x13c4   :  { %v1807_v39 = vmul.f32 -1.442695, %v1552_v31 }
0x13c6   :  { %1938 = vpow2.f32 %v1807_v39 }
0x13cc   :  { %v1939_v5 = vpop.eup %1938 }
0x13cd   :  { %v1556_v11 = vadd.f32 1.0, %v1939_v5 }
0x13cf   :  { %1940 = vrcp.f32 %v1556_v11  ;;  %v1568_v16 = vand.u32 2147483648, %v1556_v11  ;;  %v1566_v34 = vand.u32 2147483647, %v1556_v11  ;;  %vm1562_vm2 = vweird.f32 %v1556_v11 }
0x13d1   :  { %v1569_v35 = vor.u32 1.1754944e-38, %v1568_v16  ;;  %vm1567_vm4 = vcmp.eq.f32.partialorder %v1566_v34, 8.507059e+37 }
0x13d5   :  { %v1941_v50 = vpop.eup %1940 }
0x13d6   :  { %v1558_v15 = vmul.f32 %v1941_v50, %v1556_v11  ;;  %vm1563_vm15 = vweird.f32 %v1941_v50 }
0x13d7   :  { %vm1564_vm3 = vmor %vm1562_vm2, %vm1563_vm15 }
0x13d8   :  { %v1559_v52 = vsub.f32 1.0, %v1558_v15 }
0x13da   :  { %v1560_v17 = vmul.f32 %v1941_v50, %v1559_v52 }
0x13dc   :  { %v1561_v19 = vadd.f32 %v1941_v50, %v1560_v17 }
0x13de   :  { %v1565_v36 = vsel %vm1564_vm3, %v1941_v50, %v1561_v19 }
0x13df   :  { %v1570_v1 = vsel %vm1567_vm4, %v1569_v35, %v1565_v36 }
0x13e0   :  { %v1572_v26 = vmul.f32 2.0, %v1570_v1 }
0x13e2   :  { %v1808_v37 = vadd.f32 -1.0, %v1572_v26 }
0x13e4   :  { %v1574_v41 = vsel %vm2076_vm12, %v1808_v37, %v1570_v1  ;;  %vm1648_vm12 = vcmask 1046528  }
0x13e5   :  { %1577 = vrot.lane.b32.xlu2 %v1574_v41, %s1959_s15  ;;  %v1575_v54 = vmul.f32 %v1574_v41, %v1396_v33 }
0x143f   :  { %v1578_v38 = vpop.permute.xlu2 %1577 }
0x1440   :  { %v1580_v40 = vmul.f32 %v1578_v38, %v1574_v41 }
0x1442   :  { %1582 = vrot.lane.b32.xlu0 %v1580_v40, %s1960_s18 }
0x14b4   :  { %v1583_v43 = vpop.permute.xlu0 %1582 }
0x14b5   :  { %v1585_v45 = vadd.f32 %v1583_v43, %v1575_v54 }
0x14b7   :  { %1942 = vtanh.f32 %v1585_v45  ;;  %v1708_v4 = vrot.slane %v1585_v45, 1  ;;  %v1709_v32 = vperm.slane %v1585_v45, 0 }
0x14b9   :  { %v1710_v8 = vperm.slane %v1708_v4, 0  ;;  %v1713_v57 = vsel %vm1630_vm9, %v2517_v60, %v1709_v32 }
0x14bb   :  { %v1714_v56 = vsel %vm1630_vm9, %v1705_v61, %v1710_v8 }
0x14bd   :  { %v1943_v58 = vpop.eup %1942 }
0x14be   :  { %1588 = vrot.lane.b32.xlu1 %v1943_v58, %s1959_s15 }
0x1530   :  { %v1589_v49 = vpop.permute.xlu1 %1588 }
0x1531   :  { %v1591_v55 = vmul.f32 %v1589_v49, %v1574_v41 }
0x1533   :  { %v1601_v3 = vrot.slane %v1591_v55, 1  ;;  %v1626_v6 = vperm.slane %v1591_v55, 0 }
0x1535   :  { %v1627_v22 = vperm.slane %v1601_v3, 0  ;;  %v1691_v44 = vsel %vm1630_vm9, %v2523_v28, %v1626_v6  ;;  %v1649_v53 = vsel %vm1648_vm12, %v1646_v18, %v1626_v6 }
0x1536   :  { %1695 = vrot.lane.b32.xlu1 %v1691_v44, %s1960_s18  ;;  %1656 = vrot.lane.b32.xlu2 %v1649_v53, %s1960_s18 }
0x1537   :  { %v1650_v25 = vsel %vm1648_vm12, %v2530_v21, %v1627_v22  ;;  %v1692_v10 = vsel %vm1630_vm9, %v1689_v9, %v1627_v22 }
0x1538   :  { %1658 = vrot.lane.b32.xlu0 %v1650_v25, %s1960_s18 }
0x153e   :  { %1719 = vrot.lane.b32.xlu1 %v1714_v56, %s1961_s7  ;;  %1697 = vrot.lane.b32.xlu2 %v1692_v10, %s1960_s18 }
0x1540   :  { %1717 = vrot.lane.b32.xlu0 %v1713_v57, %s1961_s7 }
0x1590   :  { %v1657_v59 = vpop.permute.xlu2 %1656 }
0x1591   :  { %1809 = vmatmul.msk.f32.vlgmr.msrb.gmra.mxu0 %vm69_vm1, %v1657_v59 }
0x1598   :  { %v1698_v29 = vpop.permute.xlu2 %1697 }
0x1599   :  { %1703 = vst.msk [vmem:[%s2599_s10 + $0x2] sm:$0x3] %vm1701_vm5, %v1698_v29 }
0x15a8   :  { %v1696_v62 = vpop.permute.xlu1 %1695 }
0x15a9   :  { %1702 = vst.msk [vmem:[%s2599_s10] sm:$0x3] %vm1701_vm5, %v1696_v62 }
0x15aa   :  { %v1659_v12 = vpop.permute.xlu0 %1658 }
0x15ab   :  { %1810 = vmatmul.msk.f32.gmra.mxu0 %vm69_vm1, %v1659_v12 }
0x15b0   :  { %v1720_v33 = vpop.permute.xlu1 %1719 }
0x15b1   :  { %1724 = vst.msk [vmem:[%s2600_s11 + $0x2] sm:$0x3] %vm1701_vm5, %v1720_v33 }
0x15b2   :  { %v1718_v60 = vpop.permute.xlu0 %1717 }
0x15b3   :  { %1723 = vst.msk [vmem:[%s2600_s11] sm:$0x3] %vm1701_vm5, %v1718_v60 }
0x160e   :  { %v1681_v14 = vpop.f32.mrf.mxu0 }
0x160f   :  { %v1682_v28 = vadd.f32 %v1815_v13, %v1681_v14 }
0x1611   :  { %1687 = vst.msk [vmem:[%s2601_s9] sm:$0xff] %vm69_vm1, %v1682_v28 }
0x1628   :  { %v1684_v51 = vpop.f32.mrf.mxu0 }
0x1629   :  { %v1685_v63 = vadd.f32 %v1815_v13, %v1684_v51 }
0x162b   :  { %1688 = vst.msk [vmem:[%s2601_s9 + $0x8] sm:$0xff] %vm69_vm1, %v1685_v63 }

</bundles_post_ra>
